<compile_context>
chip_gen: v7x
topology: tpu7x:2x2x1
jax: 0.10.0
libtpu: 0.0.40
codegen_flags: <defaults>
</compile_context>

<pallas_src>
import functools

import jax
import jax.numpy as jnp
from jax.experimental import pallas as pl
from jax.experimental.pallas import tpu as pltpu

# --------------------------- small synthetic BERT config ---------------------------
HIDDEN = 32
NUM_HEADS = 2
HEAD_DIM = HIDDEN // NUM_HEADS
NUM_LAYERS = 2
INTERMEDIATE = 64
VOCAB = 100
MAX_POS = 16
NUM_LABELS = 37
OUT_PAD = 128          # lane-dense output width (real logits are the first 37 columns)
LN_EPS = 1e-12         # BERT LayerNorm eps

_BF16 = jnp.bfloat16


# --------------------------------- in-kernel helpers ---------------------------------
def _gelu(x):
    # TODO(synk): HF BERT default is exact erf-GELU; tanh approximation keeps us on
    # guaranteed Mosaic elementwise lowerings (exp/tanh).
    c = jnp.sqrt(2.0 / jnp.pi).astype(x.dtype)
    return 0.5 * x * (1.0 + jnp.tanh(c * (x + 0.044715 * x * x * x)))


def _layernorm(x, g, b):
    mean = jnp.mean(x, axis=-1, keepdims=True)
    cx = x - mean
    var = jnp.mean(cx * cx, axis=-1, keepdims=True)
    return cx * jax.lax.rsqrt(var + LN_EPS) * g + b


def _mm(x_f32, w_bf16, bias_f32):
    # bf16 MXU matmul with f32 accumulation + f32 bias (PyTorch Linear; w stored (in, out)).
    y = jnp.dot(x_f32.astype(_BF16), w_bf16, preferred_element_type=jnp.float32)
    return y + bias_f32


# --------------------------- fused whole-forward Pallas kernel -----------------------
def _dre_fwd_kernel(
    emb_ref, bias_ref, emb_ln_g_ref, emb_ln_b_ref,
    wqkv_ref, bqkv_ref, wo_ref, bo_ref, ln1_g_ref, ln1_b_ref,
    wi_ref, bi_ref, wf_ref, bf_ref, ln2_g_ref, ln2_b_ref,
    pool_w_ref, pool_b_ref, cls_w_ref, cls_b_ref,
    out_ref, ctx_ref, *, S):
    """Processes ONE sequence (grid axis 0 = batch element)."""
    scale = 1.0 / (HEAD_DIM ** 0.5)

    # --- embedding LayerNorm for this sequence ---
    x = _layernorm(emb_ref[0], emb_ln_g_ref[...], emb_ln_b_ref[...])     # (S, H) f32
    att_bias = bias_ref[0]                                               # (1, S); hoisted

    # --- encoder layers: static unroll; x and all weights stay VMEM-resident ---
    for l in range(NUM_LAYERS):
        qkv = _mm(x, wqkv_ref[l], bqkv_ref[l])                           # (S, 3H) fused QKV
        for h in range(NUM_HEADS):
            q = qkv[:, h * HEAD_DIM:(h + 1) * HEAD_DIM]
            k = qkv[:, HIDDEN + h * HEAD_DIM:HIDDEN + (h + 1) * HEAD_DIM]
            v = qkv[:, 2 * HIDDEN + h * HEAD_DIM:2 * HIDDEN + (h + 1) * HEAD_DIM]
            s = jax.lax.dot_general(                                     # q @ k.T
                q.astype(_BF16), k.astype(_BF16),
                (((1,), (1,)), ((), ())),
                preferred_element_type=jnp.float32)                      # (S, S)
            s = s * scale + att_bias
            m = jnp.max(s, axis=-1, keepdims=True)
            p = jnp.exp(s - m)
            # TODO(synk): approx reciprocal -> softmax rows sum to 1 only to ~1e-3; use an
            # exact divide if bit-level parity with the PyTorch reference is required.
            p = p * pl.reciprocal(jnp.sum(p, axis=-1, keepdims=True), approx=True)
            # write this head's context straight into the VMEM scratch (no concatenates)
            ctx_ref[:, h * HEAD_DIM:(h + 1) * HEAD_DIM] = jnp.dot(
                p.astype(_BF16), v.astype(_BF16), preferred_element_type=jnp.float32)

        attn_out = _mm(ctx_ref[...], wo_ref[l], bo_ref[l])
        x = _layernorm(attn_out + x, ln1_g_ref[l], ln1_b_ref[l])
        inter = _gelu(_mm(x, wi_ref[l], bi_ref[l]))
        ffn_out = _mm(inter, wf_ref[l], bf_ref[l])
        x = _layernorm(ffn_out + x, ln2_g_ref[l], ln2_b_ref[l])

    # --- pooler on this sequence's [CLS] row + padded lane-dense classifier + sigmoid ---
    pooled = jnp.tanh(_mm(x[0:1, :], pool_w_ref[...], pool_b_ref[...]))        # (1, H)
    out_ref[0] = jax.nn.sigmoid(_mm(pooled, cls_w_ref[...], cls_b_ref[...]))   # (1, 128)


# ------------------------------- parameter creation ----------------------------------
def init_params(seed=0):
    key = jax.random.PRNGKey(seed)

    def nxt():
        nonlocal key
        key, sub = jax.random.split(key)
        return sub

    def w(shape):  # matmul weights stored bf16 (MXU-native, half the DMA bytes)
        return (0.02 * jax.random.normal(nxt(), shape, jnp.float32)).astype(_BF16)

    L = NUM_LAYERS
    # NOTE: weights stored (in, out); real pretrained PyTorch Linear weights are (out, in)
    # and must be transposed when porting the actual bert-base checkpoint.
    p = {
        "word_emb": 0.02 * jax.random.normal(nxt(), (VOCAB, HIDDEN), jnp.float32),
        "pos_emb": 0.02 * jax.random.normal(nxt(), (MAX_POS, HIDDEN), jnp.float32),
        "tok_emb": 0.02 * jax.random.normal(nxt(), (2, HIDDEN), jnp.float32),
        "emb_ln_g": jnp.ones((1, HIDDEN), jnp.float32),
        "emb_ln_b": jnp.zeros((1, HIDDEN), jnp.float32),
        # stacked per-layer weights, leading dim = layer; Wq/Wk/Wv fused into (H, 3H)
        "wqkv": w((L, HIDDEN, 3 * HIDDEN)),
        "bqkv": jnp.zeros((L, 1, 3 * HIDDEN), jnp.float32),
        "wo": w((L, HIDDEN, HIDDEN)),
        "bo": jnp.zeros((L, 1, HIDDEN), jnp.float32),
        "ln1_g": jnp.ones((L, 1, HIDDEN), jnp.float32),
        "ln1_b": jnp.zeros((L, 1, HIDDEN), jnp.float32),
        "wi": w((L, HIDDEN, INTERMEDIATE)),
        "bi": jnp.zeros((L, 1, INTERMEDIATE), jnp.float32),
        "wf": w((L, INTERMEDIATE, HIDDEN)),
        "bf": jnp.zeros((L, 1, HIDDEN), jnp.float32),
        "ln2_g": jnp.ones((L, 1, HIDDEN), jnp.float32),
        "ln2_b": jnp.zeros((L, 1, HIDDEN), jnp.float32),
        "pool_w": w((HIDDEN, HIDDEN)),          # BertPooler
        "pool_b": jnp.zeros((1, HIDDEN), jnp.float32),
        "cls_w": w((HIDDEN, NUM_LABELS)),       # self.cls = Linear(hidden, 37)
        "cls_b": jnp.zeros((1, NUM_LABELS), jnp.float32),
    }
    return p


# ---------------------------------- forward pass -------------------------------------
def dre_forward(params, input_ids, mask):
    B, S = input_ids.shape

    # Embedding-table gathers are glue in plain JAX (no clean Pallas gather at this size).
    we = params["word_emb"][input_ids]                      # (B, S, H)
    pe = params["pos_emb"][jnp.arange(S)]                   # (S, H)
    te = params["tok_emb"][0]                               # (H,)   token_type_ids = 0
    emb = (we + pe[None, :, :] + te[None, None, :]).astype(jnp.float32)   # (B, S, H)

    # extended attention mask: (1 - mask) * -10000, shaped (B, 1, S)
    bias = ((1.0 - mask.astype(jnp.float32)) * -10000.0)[:, None, :]

    # lane-dense classifier: zero-pad 37 -> 128 output columns; sliced back after the call
    pad = OUT_PAD - NUM_LABELS
    cls_w = jnp.pad(params["cls_w"], ((0, 0), (0, pad)))
    cls_b = jnp.pad(params["cls_b"], ((0, 0), (0, pad)))

    weights = (params["emb_ln_g"], params["emb_ln_b"],
               params["wqkv"], params["bqkv"], params["wo"], params["bo"],
               params["ln1_g"], params["ln1_b"],
               params["wi"], params["bi"], params["wf"], params["bf"],
               params["ln2_g"], params["ln2_b"],
               params["pool_w"], params["pool_b"], cls_w, cls_b)

    def _full(a):
        # whole-array block, same block index on every grid step -> fetched once & revisited
        nd = a.ndim
        return pl.BlockSpec(a.shape, lambda b, _nd=nd: (0,) * _nd)

    kernel = functools.partial(_dre_fwd_kernel, S=S)

    out = pl.pallas_call(
        kernel,
        grid=(B,),                       # one sequence per step; parallel -> both TCs on v7x
        in_specs=[pl.BlockSpec((1, S, HIDDEN), lambda b: (b, 0, 0)),   # embeddings
                  pl.BlockSpec((1, 1, S), lambda b: (b, 0, 0))]        # attention bias
                 + [_full(w_) for w_ in weights],
        out_specs=pl.BlockSpec((1, 1, OUT_PAD), lambda b: (b, 0, 0)),
        out_shape=jax.ShapeDtypeStruct((B, 1, OUT_PAD), jnp.float32),
        scratch_shapes=[pltpu.VMEM((S, HIDDEN), jnp.float32)],         # per-head ctx buffer
        compiler_params=pltpu.CompilerParams(dimension_semantics=("parallel",)),
    )(emb, bias, *weights)

    return out[:, 0, :NUM_LABELS]


# -------------------------------------- main -----------------------------------------
if __name__ == "__main__":
    B, S = 2, 8
    key = jax.random.PRNGKey(0)
    k_ids, _ = jax.random.split(key)

    input_ids = jax.random.randint(k_ids, (B, S), 0, VOCAB, dtype=jnp.int32)
    mask = jnp.ones((B, S), jnp.float32).at[1, S - 2:].set(0.0)  # pad last 2 of batch 1

    params = init_params(seed=0)
    fwd = jax.jit(dre_forward)
    out = jax.block_until_ready(fwd(params, input_ids, mask))

    assert out.shape == (B, NUM_LABELS)
    assert bool(jnp.all(jnp.isfinite(out)))
    assert bool(jnp.all((out >= 0.0) & (out <= 1.0)))  # sigmoid range
    print("KERNEL_OK")
</pallas_src>

<mosaic_0001>
module attributes {stable_mosaic.version = 11 : i64} {
  func.func @_dre_fwd_kernel(%arg0: i32, %arg1: memref<1x8x32xf32, #tpu.memory_space<vmem>>, %arg2: memref<1x1x8xf32, #tpu.memory_space<vmem>>, %arg3: memref<1x32xf32, #tpu.memory_space<vmem>>, %arg4: memref<1x32xf32, #tpu.memory_space<vmem>>, %arg5: memref<2x32x96xbf16, #tpu.memory_space<vmem>>, %arg6: memref<2x1x96xf32, #tpu.memory_space<vmem>>, %arg7: memref<2x32x32xbf16, #tpu.memory_space<vmem>>, %arg8: memref<2x1x32xf32, #tpu.memory_space<vmem>>, %arg9: memref<2x1x32xf32, #tpu.memory_space<vmem>>, %arg10: memref<2x1x32xf32, #tpu.memory_space<vmem>>, %arg11: memref<2x32x64xbf16, #tpu.memory_space<vmem>>, %arg12: memref<2x1x64xf32, #tpu.memory_space<vmem>>, %arg13: memref<2x64x32xbf16, #tpu.memory_space<vmem>>, %arg14: memref<2x1x32xf32, #tpu.memory_space<vmem>>, %arg15: memref<2x1x32xf32, #tpu.memory_space<vmem>>, %arg16: memref<2x1x32xf32, #tpu.memory_space<vmem>>, %arg17: memref<32x32xbf16, #tpu.memory_space<vmem>>, %arg18: memref<1x32xf32, #tpu.memory_space<vmem>>, %arg19: memref<32x128xbf16, #tpu.memory_space<vmem>>, %arg20: memref<1x128xf32, #tpu.memory_space<vmem>>, %arg21: memref<1x1x128xf32, #tpu.memory_space<vmem>>, %arg22: memref<8x32xf32, #tpu.memory_space<vmem>>) attributes {dimension_semantics = [#tpu.dimension_semantics<parallel>], iteration_bounds = array<i64: 2>, scalar_prefetch = 0 : i64, scratch_operands = 1 : i64, tpu.core_type = #tpu.core_type<tc>, window_params = [{transform_indices = @transform_0, window_bounds = array<i64: 1, 8, 32>}, {transform_indices = @transform_1, window_bounds = array<i64: 1, 1, 8>}, {pipeline_mode = #tpu.pipeline_mode<synchronous>, transform_indices = @transform_2, window_bounds = array<i64: 1, 32>}, {pipeline_mode = #tpu.pipeline_mode<synchronous>, transform_indices = @transform_3, window_bounds = array<i64: 1, 32>}, {pipeline_mode = #tpu.pipeline_mode<synchronous>, transform_indices = @transform_4, window_bounds = array<i64: 2, 32, 96>}, {pipeline_mode = #tpu.pipeline_mode<synchronous>, transform_indices = @transform_5, window_bounds = array<i64: 2, 1, 96>}, {pipeline_mode = #tpu.pipeline_mode<synchronous>, transform_indices = @transform_6, window_bounds = array<i64: 2, 32, 32>}, {pipeline_mode = #tpu.pipeline_mode<synchronous>, transform_indices = @transform_7, window_bounds = array<i64: 2, 1, 32>}, {pipeline_mode = #tpu.pipeline_mode<synchronous>, transform_indices = @transform_8, window_bounds = array<i64: 2, 1, 32>}, {pipeline_mode = #tpu.pipeline_mode<synchronous>, transform_indices = @transform_9, window_bounds = array<i64: 2, 1, 32>}, {pipeline_mode = #tpu.pipeline_mode<synchronous>, transform_indices = @transform_10, window_bounds = array<i64: 2, 32, 64>}, {pipeline_mode = #tpu.pipeline_mode<synchronous>, transform_indices = @transform_11, window_bounds = array<i64: 2, 1, 64>}, {pipeline_mode = #tpu.pipeline_mode<synchronous>, transform_indices = @transform_12, window_bounds = array<i64: 2, 64, 32>}, {pipeline_mode = #tpu.pipeline_mode<synchronous>, transform_indices = @transform_13, window_bounds = array<i64: 2, 1, 32>}, {pipeline_mode = #tpu.pipeline_mode<synchronous>, transform_indices = @transform_14, window_bounds = array<i64: 2, 1, 32>}, {pipeline_mode = #tpu.pipeline_mode<synchronous>, transform_indices = @transform_15, window_bounds = array<i64: 2, 1, 32>}, {pipeline_mode = #tpu.pipeline_mode<synchronous>, transform_indices = @transform_16, window_bounds = array<i64: 32, 32>}, {pipeline_mode = #tpu.pipeline_mode<synchronous>, transform_indices = @transform_17, window_bounds = array<i64: 1, 32>}, {pipeline_mode = #tpu.pipeline_mode<synchronous>, transform_indices = @transform_18, window_bounds = array<i64: 32, 128>}, {pipeline_mode = #tpu.pipeline_mode<synchronous>, transform_indices = @transform_19, window_bounds = array<i64: 1, 128>}, {transform_indices = @transform_20, window_bounds = array<i64: 1, 1, 128>}]} {
    %c0 = arith.constant 0 : index
    %c0_0 = arith.constant 0 : index
    %c0_1 = arith.constant 0 : index
    %0 = vector.load %arg1[%c0, %c0_0, %c0_1] : memref<1x8x32xf32, #tpu.memory_space<vmem>>, vector<1x8x32xf32>
    %1 = vector.shape_cast %0 : vector<1x8x32xf32> to vector<8x32xf32>
    %c0_2 = arith.constant 0 : index
    %c0_3 = arith.constant 0 : index
    %2 = vector.load %arg3[%c0_2, %c0_3] : memref<1x32xf32, #tpu.memory_space<vmem>>, vector<1x32xf32>
    %c0_4 = arith.constant 0 : index
    %c0_5 = arith.constant 0 : index
    %3 = vector.load %arg4[%c0_4, %c0_5] : memref<1x32xf32, #tpu.memory_space<vmem>>, vector<1x32xf32>
    %cst = arith.constant dense<0.000000e+00> : vector<8xf32>
    %4 = vector.multi_reduction <add>, %1, %cst [1] : vector<8x32xf32> to vector<8xf32>
    %5 = vector.shape_cast %4 : vector<8xf32> to vector<8x1xf32>
    %cst_6 = arith.constant 3.200000e+01 : f32
    %6 = vector.broadcast %cst_6 : f32 to vector<8x1xf32>
    %7 = arith.divf %5, %6 : vector<8x1xf32>
    %8 = vector.broadcast %7 : vector<8x1xf32> to vector<8x32xf32>
    %9 = arith.subf %1, %8 : vector<8x32xf32>
    %10 = arith.mulf %9, %9 : vector<8x32xf32>
    %cst_7 = arith.constant dense<0.000000e+00> : vector<8xf32>
    %11 = vector.multi_reduction <add>, %10, %cst_7 [1] : vector<8x32xf32> to vector<8xf32>
    %12 = vector.shape_cast %11 : vector<8xf32> to vector<8x1xf32>
    %cst_8 = arith.constant 3.200000e+01 : f32
    %13 = vector.broadcast %cst_8 : f32 to vector<8x1xf32>
    %14 = arith.divf %12, %13 : vector<8x1xf32>
    %cst_9 = arith.constant 9.99999996E-13 : f32
    %15 = vector.broadcast %cst_9 : f32 to vector<8x1xf32>
    %16 = arith.addf %14, %15 : vector<8x1xf32>
    %17 = math.rsqrt %16 : vector<8x1xf32>
    %18 = vector.broadcast %17 : vector<8x1xf32> to vector<8x32xf32>
    %19 = arith.mulf %9, %18 : vector<8x32xf32>
    %20 = vector.broadcast %2 : vector<1x32xf32> to vector<8x32xf32>
    %21 = arith.mulf %19, %20 : vector<8x32xf32>
    %22 = vector.broadcast %3 : vector<1x32xf32> to vector<8x32xf32>
    %23 = arith.addf %21, %22 : vector<8x32xf32>
    %c0_10 = arith.constant 0 : index
    %c0_11 = arith.constant 0 : index
    %c0_12 = arith.constant 0 : index
    %24 = vector.load %arg2[%c0_10, %c0_11, %c0_12] : memref<1x1x8xf32, #tpu.memory_space<vmem>>, vector<1x1x8xf32>
    %25 = vector.shape_cast %24 : vector<1x1x8xf32> to vector<1x8xf32>
    %c0_13 = arith.constant 0 : index
    %c0_14 = arith.constant 0 : index
    %c0_15 = arith.constant 0 : index
    %26 = vector.load %arg5[%c0_13, %c0_14, %c0_15] : memref<2x32x96xbf16, #tpu.memory_space<vmem>>, vector<1x32x96xbf16>
    %27 = vector.shape_cast %26 : vector<1x32x96xbf16> to vector<32x96xbf16>
    %c0_16 = arith.constant 0 : index
    %c0_17 = arith.constant 0 : index
    %c0_18 = arith.constant 0 : index
    %28 = vector.load %arg6[%c0_16, %c0_17, %c0_18] : memref<2x1x96xf32, #tpu.memory_space<vmem>>, vector<1x1x96xf32>
    %29 = vector.shape_cast %28 : vector<1x1x96xf32> to vector<1x96xf32>
    %30 = arith.truncf %23 : vector<8x32xf32> to vector<8x32xbf16>
    %cst_19 = arith.constant dense<0.000000e+00> : vector<8x96xf32>
    %31 = tpu.matmul %30, %27, %cst_19 {dimension_numbers = #tpu.dot_dimension_numbers<[1], [0], [0], [1], [0, 0, 1, 1], [], []>} : vector<8x32xbf16>, vector<32x96xbf16>, vector<8x96xf32> -> vector<8x96xf32>
    %32 = vector.broadcast %29 : vector<1x96xf32> to vector<8x96xf32>
    %33 = arith.addf %31, %32 : vector<8x96xf32>
    %34 = vector.extract_strided_slice %33 {offsets = [0, 0], sizes = [8, 16], strides = [1, 1]} : vector<8x96xf32> to vector<8x16xf32>
    %35 = vector.extract_strided_slice %33 {offsets = [0, 32], sizes = [8, 16], strides = [1, 1]} : vector<8x96xf32> to vector<8x16xf32>
    %36 = vector.extract_strided_slice %33 {offsets = [0, 64], sizes = [8, 16], strides = [1, 1]} : vector<8x96xf32> to vector<8x16xf32>
    %37 = arith.truncf %34 : vector<8x16xf32> to vector<8x16xbf16>
    %38 = arith.truncf %35 : vector<8x16xf32> to vector<8x16xbf16>
    %cst_20 = arith.constant dense<0.000000e+00> : vector<8x8xf32>
    %39 = tpu.matmul %37, %38, %cst_20 {dimension_numbers = #tpu.dot_dimension_numbers<[1], [1], [0], [0], [0, 0, 1, 0], [], []>} : vector<8x16xbf16>, vector<8x16xbf16>, vector<8x8xf32> -> vector<8x8xf32>
    %cst_21 = arith.constant 2.500000e-01 : f32
    %40 = vector.broadcast %cst_21 : f32 to vector<8x8xf32>
    %41 = arith.mulf %39, %40 : vector<8x8xf32>
    %42 = vector.broadcast %25 : vector<1x8xf32> to vector<8x8xf32>
    %43 = arith.addf %41, %42 : vector<8x8xf32>
    %cst_22 = arith.constant dense<0xFF800000> : vector<8xf32>
    %44 = vector.multi_reduction <maximumf>, %43, %cst_22 [1] : vector<8x8xf32> to vector<8xf32>
    %45 = vector.shape_cast %44 : vector<8xf32> to vector<8x1xf32>
    %46 = vector.broadcast %45 : vector<8x1xf32> to vector<8x8xf32>
    %47 = arith.subf %43, %46 : vector<8x8xf32>
    %48 = math.exp %47 : vector<8x8xf32>
    %cst_23 = arith.constant dense<0.000000e+00> : vector<8xf32>
    %49 = vector.multi_reduction <add>, %48, %cst_23 [1] : vector<8x8xf32> to vector<8xf32>
    %50 = vector.shape_cast %49 : vector<8xf32> to vector<8x1xf32>
    %51 = tpu.reciprocal %50 {approx = true} : vector<8x1xf32> -> vector<8x1xf32>
    %52 = vector.broadcast %51 : vector<8x1xf32> to vector<8x8xf32>
    %53 = arith.mulf %48, %52 : vector<8x8xf32>
    %54 = arith.truncf %53 : vector<8x8xf32> to vector<8x8xbf16>
    %55 = arith.truncf %36 : vector<8x16xf32> to vector<8x16xbf16>
    %cst_24 = arith.constant dense<0.000000e+00> : vector<8x16xf32>
    %56 = tpu.matmul %54, %55, %cst_24 {dimension_numbers = #tpu.dot_dimension_numbers<[1], [0], [0], [1], [0, 0, 1, 1], [], []>} : vector<8x8xbf16>, vector<8x16xbf16>, vector<8x16xf32> -> vector<8x16xf32>
    %c0_25 = arith.constant 0 : index
    %c0_26 = arith.constant 0 : index
    %57 = vector.load %arg22[%c0_25, %c0_26] : memref<8x32xf32, #tpu.memory_space<vmem>>, vector<8x16xf32>
    tpu.vector_store %arg22[%c0_25, %c0_26], %56 {strides = array<i32>} : memref<8x32xf32, #tpu.memory_space<vmem>>, vector<8x16xf32>,
    %58 = vector.extract_strided_slice %33 {offsets = [0, 16], sizes = [8, 16], strides = [1, 1]} : vector<8x96xf32> to vector<8x16xf32>
    %59 = vector.extract_strided_slice %33 {offsets = [0, 48], sizes = [8, 16], strides = [1, 1]} : vector<8x96xf32> to vector<8x16xf32>
    %60 = vector.extract_strided_slice %33 {offsets = [0, 80], sizes = [8, 16], strides = [1, 1]} : vector<8x96xf32> to vector<8x16xf32>
    %61 = arith.truncf %58 : vector<8x16xf32> to vector<8x16xbf16>
    %62 = arith.truncf %59 : vector<8x16xf32> to vector<8x16xbf16>
    %cst_27 = arith.constant dense<0.000000e+00> : vector<8x8xf32>
    %63 = tpu.matmul %61, %62, %cst_27 {dimension_numbers = #tpu.dot_dimension_numbers<[1], [1], [0], [0], [0, 0, 1, 0], [], []>} : vector<8x16xbf16>, vector<8x16xbf16>, vector<8x8xf32> -> vector<8x8xf32>
    %cst_28 = arith.constant 2.500000e-01 : f32
    %64 = vector.broadcast %cst_28 : f32 to vector<8x8xf32>
    %65 = arith.mulf %63, %64 : vector<8x8xf32>
    %66 = vector.broadcast %25 : vector<1x8xf32> to vector<8x8xf32>
    %67 = arith.addf %65, %66 : vector<8x8xf32>
    %cst_29 = arith.constant dense<0xFF800000> : vector<8xf32>
    %68 = vector.multi_reduction <maximumf>, %67, %cst_29 [1] : vector<8x8xf32> to vector<8xf32>
    %69 = vector.shape_cast %68 : vector<8xf32> to vector<8x1xf32>
    %70 = vector.broadcast %69 : vector<8x1xf32> to vector<8x8xf32>
    %71 = arith.subf %67, %70 : vector<8x8xf32>
    %72 = math.exp %71 : vector<8x8xf32>
    %cst_30 = arith.constant dense<0.000000e+00> : vector<8xf32>
    %73 = vector.multi_reduction <add>, %72, %cst_30 [1] : vector<8x8xf32> to vector<8xf32>
    %74 = vector.shape_cast %73 : vector<8xf32> to vector<8x1xf32>
    %75 = tpu.reciprocal %74 {approx = true} : vector<8x1xf32> -> vector<8x1xf32>
    %76 = vector.broadcast %75 : vector<8x1xf32> to vector<8x8xf32>
    %77 = arith.mulf %72, %76 : vector<8x8xf32>
    %78 = arith.truncf %77 : vector<8x8xf32> to vector<8x8xbf16>
    %79 = arith.truncf %60 : vector<8x16xf32> to vector<8x16xbf16>
    %cst_31 = arith.constant dense<0.000000e+00> : vector<8x16xf32>
    %80 = tpu.matmul %78, %79, %cst_31 {dimension_numbers = #tpu.dot_dimension_numbers<[1], [0], [0], [1], [0, 0, 1, 1], [], []>} : vector<8x8xbf16>, vector<8x16xbf16>, vector<8x16xf32> -> vector<8x16xf32>
    %c0_32 = arith.constant 0 : index
    %c16 = arith.constant 16 : index
    %81 = vector.load %arg22[%c0_32, %c16] : memref<8x32xf32, #tpu.memory_space<vmem>>, vector<8x16xf32>
    tpu.vector_store %arg22[%c0_32, %c16], %80 {strides = array<i32>} : memref<8x32xf32, #tpu.memory_space<vmem>>, vector<8x16xf32>,
    %c0_33 = arith.constant 0 : index
    %c0_34 = arith.constant 0 : index
    %82 = vector.load %arg22[%c0_33, %c0_34] : memref<8x32xf32, #tpu.memory_space<vmem>>, vector<8x32xf32>
    %c0_35 = arith.constant 0 : index
    %c0_36 = arith.constant 0 : index
    %c0_37 = arith.constant 0 : index
    %83 = vector.load %arg7[%c0_35, %c0_36, %c0_37] : memref<2x32x32xbf16, #tpu.memory_space<vmem>>, vector<1x32x32xbf16>
    %84 = vector.shape_cast %83 : vector<1x32x32xbf16> to vector<32x32xbf16>
    %c0_38 = arith.constant 0 : index
    %c0_39 = arith.constant 0 : index
    %c0_40 = arith.constant 0 : index
    %85 = vector.load %arg8[%c0_38, %c0_39, %c0_40] : memref<2x1x32xf32, #tpu.memory_space<vmem>>, vector<1x1x32xf32>
    %86 = vector.shape_cast %85 : vector<1x1x32xf32> to vector<1x32xf32>
    %87 = arith.truncf %82 : vector<8x32xf32> to vector<8x32xbf16>
    %cst_41 = arith.constant dense<0.000000e+00> : vector<8x32xf32>
    %88 = tpu.matmul %87, %84, %cst_41 {dimension_numbers = #tpu.dot_dimension_numbers<[1], [0], [0], [1], [0, 0, 1, 1], [], []>} : vector<8x32xbf16>, vector<32x32xbf16>, vector<8x32xf32> -> vector<8x32xf32>
    %89 = vector.broadcast %86 : vector<1x32xf32> to vector<8x32xf32>
    %90 = arith.addf %88, %89 : vector<8x32xf32>
    %91 = arith.addf %90, %23 : vector<8x32xf32>
    %c0_42 = arith.constant 0 : index
    %c0_43 = arith.constant 0 : index
    %c0_44 = arith.constant 0 : index
    %92 = vector.load %arg9[%c0_42, %c0_43, %c0_44] : memref<2x1x32xf32, #tpu.memory_space<vmem>>, vector<1x1x32xf32>
    %93 = vector.shape_cast %92 : vector<1x1x32xf32> to vector<1x32xf32>
    %c0_45 = arith.constant 0 : index
    %c0_46 = arith.constant 0 : index
    %c0_47 = arith.constant 0 : index
    %94 = vector.load %arg10[%c0_45, %c0_46, %c0_47] : memref<2x1x32xf32, #tpu.memory_space<vmem>>, vector<1x1x32xf32>
    %95 = vector.shape_cast %94 : vector<1x1x32xf32> to vector<1x32xf32>
    %cst_48 = arith.constant dense<0.000000e+00> : vector<8xf32>
    %96 = vector.multi_reduction <add>, %91, %cst_48 [1] : vector<8x32xf32> to vector<8xf32>
    %97 = vector.shape_cast %96 : vector<8xf32> to vector<8x1xf32>
    %cst_49 = arith.constant 3.200000e+01 : f32
    %98 = vector.broadcast %cst_49 : f32 to vector<8x1xf32>
    %99 = arith.divf %97, %98 : vector<8x1xf32>
    %100 = vector.broadcast %99 : vector<8x1xf32> to vector<8x32xf32>
    %101 = arith.subf %91, %100 : vector<8x32xf32>
    %102 = arith.mulf %101, %101 : vector<8x32xf32>
    %cst_50 = arith.constant dense<0.000000e+00> : vector<8xf32>
    %103 = vector.multi_reduction <add>, %102, %cst_50 [1] : vector<8x32xf32> to vector<8xf32>
    %104 = vector.shape_cast %103 : vector<8xf32> to vector<8x1xf32>
    %cst_51 = arith.constant 3.200000e+01 : f32
    %105 = vector.broadcast %cst_51 : f32 to vector<8x1xf32>
    %106 = arith.divf %104, %105 : vector<8x1xf32>
    %cst_52 = arith.constant 9.99999996E-13 : f32
    %107 = vector.broadcast %cst_52 : f32 to vector<8x1xf32>
    %108 = arith.addf %106, %107 : vector<8x1xf32>
    %109 = math.rsqrt %108 : vector<8x1xf32>
    %110 = vector.broadcast %109 : vector<8x1xf32> to vector<8x32xf32>
    %111 = arith.mulf %101, %110 : vector<8x32xf32>
    %112 = vector.broadcast %93 : vector<1x32xf32> to vector<8x32xf32>
    %113 = arith.mulf %111, %112 : vector<8x32xf32>
    %114 = vector.broadcast %95 : vector<1x32xf32> to vector<8x32xf32>
    %115 = arith.addf %113, %114 : vector<8x32xf32>
    %c0_53 = arith.constant 0 : index
    %c0_54 = arith.constant 0 : index
    %c0_55 = arith.constant 0 : index
    %116 = vector.load %arg11[%c0_53, %c0_54, %c0_55] : memref<2x32x64xbf16, #tpu.memory_space<vmem>>, vector<1x32x64xbf16>
    %117 = vector.shape_cast %116 : vector<1x32x64xbf16> to vector<32x64xbf16>
    %c0_56 = arith.constant 0 : index
    %c0_57 = arith.constant 0 : index
    %c0_58 = arith.constant 0 : index
    %118 = vector.load %arg12[%c0_56, %c0_57, %c0_58] : memref<2x1x64xf32, #tpu.memory_space<vmem>>, vector<1x1x64xf32>
    %119 = vector.shape_cast %118 : vector<1x1x64xf32> to vector<1x64xf32>
    %120 = arith.truncf %115 : vector<8x32xf32> to vector<8x32xbf16>
    %cst_59 = arith.constant dense<0.000000e+00> : vector<8x64xf32>
    %121 = tpu.matmul %120, %117, %cst_59 {dimension_numbers = #tpu.dot_dimension_numbers<[1], [0], [0], [1], [0, 0, 1, 1], [], []>} : vector<8x32xbf16>, vector<32x64xbf16>, vector<8x64xf32> -> vector<8x64xf32>
    %122 = vector.broadcast %119 : vector<1x64xf32> to vector<8x64xf32>
    %123 = arith.addf %121, %122 : vector<8x64xf32>
    %cst_60 = arith.constant 0.636619746 : f32
    %124 = math.sqrt %cst_60 : f32
    %cst_61 = arith.constant 5.000000e-01 : f32
    %125 = vector.broadcast %cst_61 : f32 to vector<8x64xf32>
    %126 = arith.mulf %125, %123 : vector<8x64xf32>
    %cst_62 = arith.constant 4.471500e-02 : f32
    %127 = vector.broadcast %cst_62 : f32 to vector<8x64xf32>
    %128 = arith.mulf %127, %123 : vector<8x64xf32>
    %129 = arith.mulf %128, %123 : vector<8x64xf32>
    %130 = arith.mulf %129, %123 : vector<8x64xf32>
    %131 = arith.addf %123, %130 : vector<8x64xf32>
    %132 = vector.broadcast %124 : f32 to vector<8x64xf32>
    %133 = arith.mulf %132, %131 : vector<8x64xf32>
    %134 = math.tanh %133 : vector<8x64xf32>
    %cst_63 = arith.constant 1.000000e+00 : f32
    %135 = vector.broadcast %cst_63 : f32 to vector<8x64xf32>
    %136 = arith.addf %135, %134 : vector<8x64xf32>
    %137 = arith.mulf %126, %136 : vector<8x64xf32>
    %c0_64 = arith.constant 0 : index
    %c0_65 = arith.constant 0 : index
    %c0_66 = arith.constant 0 : index
    %138 = vector.load %arg13[%c0_64, %c0_65, %c0_66] : memref<2x64x32xbf16, #tpu.memory_space<vmem>>, vector<1x64x32xbf16>
    %139 = vector.shape_cast %138 : vector<1x64x32xbf16> to vector<64x32xbf16>
    %c0_67 = arith.constant 0 : index
    %c0_68 = arith.constant 0 : index
    %c0_69 = arith.constant 0 : index
    %140 = vector.load %arg14[%c0_67, %c0_68, %c0_69] : memref<2x1x32xf32, #tpu.memory_space<vmem>>, vector<1x1x32xf32>
    %141 = vector.shape_cast %140 : vector<1x1x32xf32> to vector<1x32xf32>
    %142 = arith.truncf %137 : vector<8x64xf32> to vector<8x64xbf16>
    %cst_70 = arith.constant dense<0.000000e+00> : vector<8x32xf32>
    %143 = tpu.matmul %142, %139, %cst_70 {dimension_numbers = #tpu.dot_dimension_numbers<[1], [0], [0], [1], [0, 0, 1, 1], [], []>} : vector<8x64xbf16>, vector<64x32xbf16>, vector<8x32xf32> -> vector<8x32xf32>
    %144 = vector.broadcast %141 : vector<1x32xf32> to vector<8x32xf32>
    %145 = arith.addf %143, %144 : vector<8x32xf32>
    %146 = arith.addf %145, %115 : vector<8x32xf32>
    %c0_71 = arith.constant 0 : index
    %c0_72 = arith.constant 0 : index
    %c0_73 = arith.constant 0 : index
    %147 = vector.load %arg15[%c0_71, %c0_72, %c0_73] : memref<2x1x32xf32, #tpu.memory_space<vmem>>, vector<1x1x32xf32>
    %148 = vector.shape_cast %147 : vector<1x1x32xf32> to vector<1x32xf32>
    %c0_74 = arith.constant 0 : index
    %c0_75 = arith.constant 0 : index
    %c0_76 = arith.constant 0 : index
    %149 = vector.load %arg16[%c0_74, %c0_75, %c0_76] : memref<2x1x32xf32, #tpu.memory_space<vmem>>, vector<1x1x32xf32>
    %150 = vector.shape_cast %149 : vector<1x1x32xf32> to vector<1x32xf32>
    %cst_77 = arith.constant dense<0.000000e+00> : vector<8xf32>
    %151 = vector.multi_reduction <add>, %146, %cst_77 [1] : vector<8x32xf32> to vector<8xf32>
    %152 = vector.shape_cast %151 : vector<8xf32> to vector<8x1xf32>
    %cst_78 = arith.constant 3.200000e+01 : f32
    %153 = vector.broadcast %cst_78 : f32 to vector<8x1xf32>
    %154 = arith.divf %152, %153 : vector<8x1xf32>
    %155 = vector.broadcast %154 : vector<8x1xf32> to vector<8x32xf32>
    %156 = arith.subf %146, %155 : vector<8x32xf32>
    %157 = arith.mulf %156, %156 : vector<8x32xf32>
    %cst_79 = arith.constant dense<0.000000e+00> : vector<8xf32>
    %158 = vector.multi_reduction <add>, %157, %cst_79 [1] : vector<8x32xf32> to vector<8xf32>
    %159 = vector.shape_cast %158 : vector<8xf32> to vector<8x1xf32>
    %cst_80 = arith.constant 3.200000e+01 : f32
    %160 = vector.broadcast %cst_80 : f32 to vector<8x1xf32>
    %161 = arith.divf %159, %160 : vector<8x1xf32>
    %cst_81 = arith.constant 9.99999996E-13 : f32
    %162 = vector.broadcast %cst_81 : f32 to vector<8x1xf32>
    %163 = arith.addf %161, %162 : vector<8x1xf32>
    %164 = math.rsqrt %163 : vector<8x1xf32>
    %165 = vector.broadcast %164 : vector<8x1xf32> to vector<8x32xf32>
    %166 = arith.mulf %156, %165 : vector<8x32xf32>
    %167 = vector.broadcast %148 : vector<1x32xf32> to vector<8x32xf32>
    %168 = arith.mulf %166, %167 : vector<8x32xf32>
    %169 = vector.broadcast %150 : vector<1x32xf32> to vector<8x32xf32>
    %170 = arith.addf %168, %169 : vector<8x32xf32>
    %c1 = arith.constant 1 : index
    %c0_82 = arith.constant 0 : index
    %c0_83 = arith.constant 0 : index
    %171 = vector.load %arg5[%c1, %c0_82, %c0_83] : memref<2x32x96xbf16, #tpu.memory_space<vmem>>, vector<1x32x96xbf16>
    %172 = vector.shape_cast %171 : vector<1x32x96xbf16> to vector<32x96xbf16>
    %c1_84 = arith.constant 1 : index
    %c0_85 = arith.constant 0 : index
    %c0_86 = arith.constant 0 : index
    %173 = vector.load %arg6[%c1_84, %c0_85, %c0_86] : memref<2x1x96xf32, #tpu.memory_space<vmem>>, vector<1x1x96xf32>
    %174 = vector.shape_cast %173 : vector<1x1x96xf32> to vector<1x96xf32>
    %175 = arith.truncf %170 : vector<8x32xf32> to vector<8x32xbf16>
    %cst_87 = arith.constant dense<0.000000e+00> : vector<8x96xf32>
    %176 = tpu.matmul %175, %172, %cst_87 {dimension_numbers = #tpu.dot_dimension_numbers<[1], [0], [0], [1], [0, 0, 1, 1], [], []>} : vector<8x32xbf16>, vector<32x96xbf16>, vector<8x96xf32> -> vector<8x96xf32>
    %177 = vector.broadcast %174 : vector<1x96xf32> to vector<8x96xf32>
    %178 = arith.addf %176, %177 : vector<8x96xf32>
    %179 = vector.extract_strided_slice %178 {offsets = [0, 0], sizes = [8, 16], strides = [1, 1]} : vector<8x96xf32> to vector<8x16xf32>
    %180 = vector.extract_strided_slice %178 {offsets = [0, 32], sizes = [8, 16], strides = [1, 1]} : vector<8x96xf32> to vector<8x16xf32>
    %181 = vector.extract_strided_slice %178 {offsets = [0, 64], sizes = [8, 16], strides = [1, 1]} : vector<8x96xf32> to vector<8x16xf32>
    %182 = arith.truncf %179 : vector<8x16xf32> to vector<8x16xbf16>
    %183 = arith.truncf %180 : vector<8x16xf32> to vector<8x16xbf16>
    %cst_88 = arith.constant dense<0.000000e+00> : vector<8x8xf32>
    %184 = tpu.matmul %182, %183, %cst_88 {dimension_numbers = #tpu.dot_dimension_numbers<[1], [1], [0], [0], [0, 0, 1, 0], [], []>} : vector<8x16xbf16>, vector<8x16xbf16>, vector<8x8xf32> -> vector<8x8xf32>
    %cst_89 = arith.constant 2.500000e-01 : f32
    %185 = vector.broadcast %cst_89 : f32 to vector<8x8xf32>
    %186 = arith.mulf %184, %185 : vector<8x8xf32>
    %187 = vector.broadcast %25 : vector<1x8xf32> to vector<8x8xf32>
    %188 = arith.addf %186, %187 : vector<8x8xf32>
    %cst_90 = arith.constant dense<0xFF800000> : vector<8xf32>
    %189 = vector.multi_reduction <maximumf>, %188, %cst_90 [1] : vector<8x8xf32> to vector<8xf32>
    %190 = vector.shape_cast %189 : vector<8xf32> to vector<8x1xf32>
    %191 = vector.broadcast %190 : vector<8x1xf32> to vector<8x8xf32>
    %192 = arith.subf %188, %191 : vector<8x8xf32>
    %193 = math.exp %192 : vector<8x8xf32>
    %cst_91 = arith.constant dense<0.000000e+00> : vector<8xf32>
    %194 = vector.multi_reduction <add>, %193, %cst_91 [1] : vector<8x8xf32> to vector<8xf32>
    %195 = vector.shape_cast %194 : vector<8xf32> to vector<8x1xf32>
    %196 = tpu.reciprocal %195 {approx = true} : vector<8x1xf32> -> vector<8x1xf32>
    %197 = vector.broadcast %196 : vector<8x1xf32> to vector<8x8xf32>
    %198 = arith.mulf %193, %197 : vector<8x8xf32>
    %199 = arith.truncf %198 : vector<8x8xf32> to vector<8x8xbf16>
    %200 = arith.truncf %181 : vector<8x16xf32> to vector<8x16xbf16>
    %cst_92 = arith.constant dense<0.000000e+00> : vector<8x16xf32>
    %201 = tpu.matmul %199, %200, %cst_92 {dimension_numbers = #tpu.dot_dimension_numbers<[1], [0], [0], [1], [0, 0, 1, 1], [], []>} : vector<8x8xbf16>, vector<8x16xbf16>, vector<8x16xf32> -> vector<8x16xf32>
    %c0_93 = arith.constant 0 : index
    %c0_94 = arith.constant 0 : index
    %202 = vector.load %arg22[%c0_93, %c0_94] : memref<8x32xf32, #tpu.memory_space<vmem>>, vector<8x16xf32>
    tpu.vector_store %arg22[%c0_93, %c0_94], %201 {strides = array<i32>} : memref<8x32xf32, #tpu.memory_space<vmem>>, vector<8x16xf32>,
    %203 = vector.extract_strided_slice %178 {offsets = [0, 16], sizes = [8, 16], strides = [1, 1]} : vector<8x96xf32> to vector<8x16xf32>
    %204 = vector.extract_strided_slice %178 {offsets = [0, 48], sizes = [8, 16], strides = [1, 1]} : vector<8x96xf32> to vector<8x16xf32>
    %205 = vector.extract_strided_slice %178 {offsets = [0, 80], sizes = [8, 16], strides = [1, 1]} : vector<8x96xf32> to vector<8x16xf32>
    %206 = arith.truncf %203 : vector<8x16xf32> to vector<8x16xbf16>
    %207 = arith.truncf %204 : vector<8x16xf32> to vector<8x16xbf16>
    %cst_95 = arith.constant dense<0.000000e+00> : vector<8x8xf32>
    %208 = tpu.matmul %206, %207, %cst_95 {dimension_numbers = #tpu.dot_dimension_numbers<[1], [1], [0], [0], [0, 0, 1, 0], [], []>} : vector<8x16xbf16>, vector<8x16xbf16>, vector<8x8xf32> -> vector<8x8xf32>
    %cst_96 = arith.constant 2.500000e-01 : f32
    %209 = vector.broadcast %cst_96 : f32 to vector<8x8xf32>
    %210 = arith.mulf %208, %209 : vector<8x8xf32>
    %211 = vector.broadcast %25 : vector<1x8xf32> to vector<8x8xf32>
    %212 = arith.addf %210, %211 : vector<8x8xf32>
    %cst_97 = arith.constant dense<0xFF800000> : vector<8xf32>
    %213 = vector.multi_reduction <maximumf>, %212, %cst_97 [1] : vector<8x8xf32> to vector<8xf32>
    %214 = vector.shape_cast %213 : vector<8xf32> to vector<8x1xf32>
    %215 = vector.broadcast %214 : vector<8x1xf32> to vector<8x8xf32>
    %216 = arith.subf %212, %215 : vector<8x8xf32>
    %217 = math.exp %216 : vector<8x8xf32>
    %cst_98 = arith.constant dense<0.000000e+00> : vector<8xf32>
    %218 = vector.multi_reduction <add>, %217, %cst_98 [1] : vector<8x8xf32> to vector<8xf32>
    %219 = vector.shape_cast %218 : vector<8xf32> to vector<8x1xf32>
    %220 = tpu.reciprocal %219 {approx = true} : vector<8x1xf32> -> vector<8x1xf32>
    %221 = vector.broadcast %220 : vector<8x1xf32> to vector<8x8xf32>
    %222 = arith.mulf %217, %221 : vector<8x8xf32>
    %223 = arith.truncf %222 : vector<8x8xf32> to vector<8x8xbf16>
    %224 = arith.truncf %205 : vector<8x16xf32> to vector<8x16xbf16>
    %cst_99 = arith.constant dense<0.000000e+00> : vector<8x16xf32>
    %225 = tpu.matmul %223, %224, %cst_99 {dimension_numbers = #tpu.dot_dimension_numbers<[1], [0], [0], [1], [0, 0, 1, 1], [], []>} : vector<8x8xbf16>, vector<8x16xbf16>, vector<8x16xf32> -> vector<8x16xf32>
    %c0_100 = arith.constant 0 : index
    %c16_101 = arith.constant 16 : index
    %226 = vector.load %arg22[%c0_100, %c16_101] : memref<8x32xf32, #tpu.memory_space<vmem>>, vector<8x16xf32>
    tpu.vector_store %arg22[%c0_100, %c16_101], %225 {strides = array<i32>} : memref<8x32xf32, #tpu.memory_space<vmem>>, vector<8x16xf32>,
    %c0_102 = arith.constant 0 : index
    %c0_103 = arith.constant 0 : index
    %227 = vector.load %arg22[%c0_102, %c0_103] : memref<8x32xf32, #tpu.memory_space<vmem>>, vector<8x32xf32>
    %c1_104 = arith.constant 1 : index
    %c0_105 = arith.constant 0 : index
    %c0_106 = arith.constant 0 : index
    %228 = vector.load %arg7[%c1_104, %c0_105, %c0_106] : memref<2x32x32xbf16, #tpu.memory_space<vmem>>, vector<1x32x32xbf16>
    %229 = vector.shape_cast %228 : vector<1x32x32xbf16> to vector<32x32xbf16>
    %c1_107 = arith.constant 1 : index
    %c0_108 = arith.constant 0 : index
    %c0_109 = arith.constant 0 : index
    %230 = vector.load %arg8[%c1_107, %c0_108, %c0_109] : memref<2x1x32xf32, #tpu.memory_space<vmem>>, vector<1x1x32xf32>
    %231 = vector.shape_cast %230 : vector<1x1x32xf32> to vector<1x32xf32>
    %232 = arith.truncf %227 : vector<8x32xf32> to vector<8x32xbf16>
    %cst_110 = arith.constant dense<0.000000e+00> : vector<8x32xf32>
    %233 = tpu.matmul %232, %229, %cst_110 {dimension_numbers = #tpu.dot_dimension_numbers<[1], [0], [0], [1], [0, 0, 1, 1], [], []>} : vector<8x32xbf16>, vector<32x32xbf16>, vector<8x32xf32> -> vector<8x32xf32>
    %234 = vector.broadcast %231 : vector<1x32xf32> to vector<8x32xf32>
    %235 = arith.addf %233, %234 : vector<8x32xf32>
    %236 = arith.addf %235, %170 : vector<8x32xf32>
    %c1_111 = arith.constant 1 : index
    %c0_112 = arith.constant 0 : index
    %c0_113 = arith.constant 0 : index
    %237 = vector.load %arg9[%c1_111, %c0_112, %c0_113] : memref<2x1x32xf32, #tpu.memory_space<vmem>>, vector<1x1x32xf32>
    %238 = vector.shape_cast %237 : vector<1x1x32xf32> to vector<1x32xf32>
    %c1_114 = arith.constant 1 : index
    %c0_115 = arith.constant 0 : index
    %c0_116 = arith.constant 0 : index
    %239 = vector.load %arg10[%c1_114, %c0_115, %c0_116] : memref<2x1x32xf32, #tpu.memory_space<vmem>>, vector<1x1x32xf32>
    %240 = vector.shape_cast %239 : vector<1x1x32xf32> to vector<1x32xf32>
    %cst_117 = arith.constant dense<0.000000e+00> : vector<8xf32>
    %241 = vector.multi_reduction <add>, %236, %cst_117 [1] : vector<8x32xf32> to vector<8xf32>
    %242 = vector.shape_cast %241 : vector<8xf32> to vector<8x1xf32>
    %cst_118 = arith.constant 3.200000e+01 : f32
    %243 = vector.broadcast %cst_118 : f32 to vector<8x1xf32>
    %244 = arith.divf %242, %243 : vector<8x1xf32>
    %245 = vector.broadcast %244 : vector<8x1xf32> to vector<8x32xf32>
    %246 = arith.subf %236, %245 : vector<8x32xf32>
    %247 = arith.mulf %246, %246 : vector<8x32xf32>
    %cst_119 = arith.constant dense<0.000000e+00> : vector<8xf32>
    %248 = vector.multi_reduction <add>, %247, %cst_119 [1] : vector<8x32xf32> to vector<8xf32>
    %249 = vector.shape_cast %248 : vector<8xf32> to vector<8x1xf32>
    %cst_120 = arith.constant 3.200000e+01 : f32
    %250 = vector.broadcast %cst_120 : f32 to vector<8x1xf32>
    %251 = arith.divf %249, %250 : vector<8x1xf32>
    %cst_121 = arith.constant 9.99999996E-13 : f32
    %252 = vector.broadcast %cst_121 : f32 to vector<8x1xf32>
    %253 = arith.addf %251, %252 : vector<8x1xf32>
    %254 = math.rsqrt %253 : vector<8x1xf32>
    %255 = vector.broadcast %254 : vector<8x1xf32> to vector<8x32xf32>
    %256 = arith.mulf %246, %255 : vector<8x32xf32>
    %257 = vector.broadcast %238 : vector<1x32xf32> to vector<8x32xf32>
    %258 = arith.mulf %256, %257 : vector<8x32xf32>
    %259 = vector.broadcast %240 : vector<1x32xf32> to vector<8x32xf32>
    %260 = arith.addf %258, %259 : vector<8x32xf32>
    %c1_122 = arith.constant 1 : index
    %c0_123 = arith.constant 0 : index
    %c0_124 = arith.constant 0 : index
    %261 = vector.load %arg11[%c1_122, %c0_123, %c0_124] : memref<2x32x64xbf16, #tpu.memory_space<vmem>>, vector<1x32x64xbf16>
    %262 = vector.shape_cast %261 : vector<1x32x64xbf16> to vector<32x64xbf16>
    %c1_125 = arith.constant 1 : index
    %c0_126 = arith.constant 0 : index
    %c0_127 = arith.constant 0 : index
    %263 = vector.load %arg12[%c1_125, %c0_126, %c0_127] : memref<2x1x64xf32, #tpu.memory_space<vmem>>, vector<1x1x64xf32>
    %264 = vector.shape_cast %263 : vector<1x1x64xf32> to vector<1x64xf32>
    %265 = arith.truncf %260 : vector<8x32xf32> to vector<8x32xbf16>
    %cst_128 = arith.constant dense<0.000000e+00> : vector<8x64xf32>
    %266 = tpu.matmul %265, %262, %cst_128 {dimension_numbers = #tpu.dot_dimension_numbers<[1], [0], [0], [1], [0, 0, 1, 1], [], []>} : vector<8x32xbf16>, vector<32x64xbf16>, vector<8x64xf32> -> vector<8x64xf32>
    %267 = vector.broadcast %264 : vector<1x64xf32> to vector<8x64xf32>
    %268 = arith.addf %266, %267 : vector<8x64xf32>
    %cst_129 = arith.constant 0.636619746 : f32
    %269 = math.sqrt %cst_129 : f32
    %cst_130 = arith.constant 5.000000e-01 : f32
    %270 = vector.broadcast %cst_130 : f32 to vector<8x64xf32>
    %271 = arith.mulf %270, %268 : vector<8x64xf32>
    %cst_131 = arith.constant 4.471500e-02 : f32
    %272 = vector.broadcast %cst_131 : f32 to vector<8x64xf32>
    %273 = arith.mulf %272, %268 : vector<8x64xf32>
    %274 = arith.mulf %273, %268 : vector<8x64xf32>
    %275 = arith.mulf %274, %268 : vector<8x64xf32>
    %276 = arith.addf %268, %275 : vector<8x64xf32>
    %277 = vector.broadcast %269 : f32 to vector<8x64xf32>
    %278 = arith.mulf %277, %276 : vector<8x64xf32>
    %279 = math.tanh %278 : vector<8x64xf32>
    %cst_132 = arith.constant 1.000000e+00 : f32
    %280 = vector.broadcast %cst_132 : f32 to vector<8x64xf32>
    %281 = arith.addf %280, %279 : vector<8x64xf32>
    %282 = arith.mulf %271, %281 : vector<8x64xf32>
    %c1_133 = arith.constant 1 : index
    %c0_134 = arith.constant 0 : index
    %c0_135 = arith.constant 0 : index
    %283 = vector.load %arg13[%c1_133, %c0_134, %c0_135] : memref<2x64x32xbf16, #tpu.memory_space<vmem>>, vector<1x64x32xbf16>
    %284 = vector.shape_cast %283 : vector<1x64x32xbf16> to vector<64x32xbf16>
    %c1_136 = arith.constant 1 : index
    %c0_137 = arith.constant 0 : index
    %c0_138 = arith.constant 0 : index
    %285 = vector.load %arg14[%c1_136, %c0_137, %c0_138] : memref<2x1x32xf32, #tpu.memory_space<vmem>>, vector<1x1x32xf32>
    %286 = vector.shape_cast %285 : vector<1x1x32xf32> to vector<1x32xf32>
    %287 = arith.truncf %282 : vector<8x64xf32> to vector<8x64xbf16>
    %cst_139 = arith.constant dense<0.000000e+00> : vector<8x32xf32>
    %288 = tpu.matmul %287, %284, %cst_139 {dimension_numbers = #tpu.dot_dimension_numbers<[1], [0], [0], [1], [0, 0, 1, 1], [], []>} : vector<8x64xbf16>, vector<64x32xbf16>, vector<8x32xf32> -> vector<8x32xf32>
    %289 = vector.broadcast %286 : vector<1x32xf32> to vector<8x32xf32>
    %290 = arith.addf %288, %289 : vector<8x32xf32>
    %291 = arith.addf %290, %260 : vector<8x32xf32>
    %c1_140 = arith.constant 1 : index
    %c0_141 = arith.constant 0 : index
    %c0_142 = arith.constant 0 : index
    %292 = vector.load %arg15[%c1_140, %c0_141, %c0_142] : memref<2x1x32xf32, #tpu.memory_space<vmem>>, vector<1x1x32xf32>
    %293 = vector.shape_cast %292 : vector<1x1x32xf32> to vector<1x32xf32>
    %c1_143 = arith.constant 1 : index
    %c0_144 = arith.constant 0 : index
    %c0_145 = arith.constant 0 : index
    %294 = vector.load %arg16[%c1_143, %c0_144, %c0_145] : memref<2x1x32xf32, #tpu.memory_space<vmem>>, vector<1x1x32xf32>
    %295 = vector.shape_cast %294 : vector<1x1x32xf32> to vector<1x32xf32>
    %cst_146 = arith.constant dense<0.000000e+00> : vector<8xf32>
    %296 = vector.multi_reduction <add>, %291, %cst_146 [1] : vector<8x32xf32> to vector<8xf32>
    %297 = vector.shape_cast %296 : vector<8xf32> to vector<8x1xf32>
    %cst_147 = arith.constant 3.200000e+01 : f32
    %298 = vector.broadcast %cst_147 : f32 to vector<8x1xf32>
    %299 = arith.divf %297, %298 : vector<8x1xf32>
    %300 = vector.broadcast %299 : vector<8x1xf32> to vector<8x32xf32>
    %301 = arith.subf %291, %300 : vector<8x32xf32>
    %302 = arith.mulf %301, %301 : vector<8x32xf32>
    %cst_148 = arith.constant dense<0.000000e+00> : vector<8xf32>
    %303 = vector.multi_reduction <add>, %302, %cst_148 [1] : vector<8x32xf32> to vector<8xf32>
    %304 = vector.shape_cast %303 : vector<8xf32> to vector<8x1xf32>
    %cst_149 = arith.constant 3.200000e+01 : f32
    %305 = vector.broadcast %cst_149 : f32 to vector<8x1xf32>
    %306 = arith.divf %304, %305 : vector<8x1xf32>
    %cst_150 = arith.constant 9.99999996E-13 : f32
    %307 = vector.broadcast %cst_150 : f32 to vector<8x1xf32>
    %308 = arith.addf %306, %307 : vector<8x1xf32>
    %309 = math.rsqrt %308 : vector<8x1xf32>
    %310 = vector.broadcast %309 : vector<8x1xf32> to vector<8x32xf32>
    %311 = arith.mulf %301, %310 : vector<8x32xf32>
    %312 = vector.broadcast %293 : vector<1x32xf32> to vector<8x32xf32>
    %313 = arith.mulf %311, %312 : vector<8x32xf32>
    %314 = vector.broadcast %295 : vector<1x32xf32> to vector<8x32xf32>
    %315 = arith.addf %313, %314 : vector<8x32xf32>
    %316 = vector.extract_strided_slice %315 {offsets = [0, 0], sizes = [1, 32], strides = [1, 1]} : vector<8x32xf32> to vector<1x32xf32>
    %c0_151 = arith.constant 0 : index
    %c0_152 = arith.constant 0 : index
    %317 = vector.load %arg17[%c0_151, %c0_152] : memref<32x32xbf16, #tpu.memory_space<vmem>>, vector<32x32xbf16>
    %c0_153 = arith.constant 0 : index
    %c0_154 = arith.constant 0 : index
    %318 = vector.load %arg18[%c0_153, %c0_154] : memref<1x32xf32, #tpu.memory_space<vmem>>, vector<1x32xf32>
    %319 = arith.truncf %316 : vector<1x32xf32> to vector<1x32xbf16>
    %cst_155 = arith.constant dense<0.000000e+00> : vector<1x32xf32>
    %320 = tpu.matmul %319, %317, %cst_155 {dimension_numbers = #tpu.dot_dimension_numbers<[1], [0], [0], [1], [0, 0, 1, 1], [], []>} : vector<1x32xbf16>, vector<32x32xbf16>, vector<1x32xf32> -> vector<1x32xf32>
    %321 = arith.addf %320, %318 : vector<1x32xf32>
    %322 = math.tanh %321 : vector<1x32xf32>
    %c0_156 = arith.constant 0 : index
    %c0_157 = arith.constant 0 : index
    %323 = vector.load %arg19[%c0_156, %c0_157] : memref<32x128xbf16, #tpu.memory_space<vmem>>, vector<32x128xbf16>
    %c0_158 = arith.constant 0 : index
    %c0_159 = arith.constant 0 : index
    %324 = vector.load %arg20[%c0_158, %c0_159] : memref<1x128xf32, #tpu.memory_space<vmem>>, vector<1x128xf32>
    %325 = arith.truncf %322 : vector<1x32xf32> to vector<1x32xbf16>
    %cst_160 = arith.constant dense<0.000000e+00> : vector<1x128xf32>
    %326 = tpu.matmul %325, %323, %cst_160 {dimension_numbers = #tpu.dot_dimension_numbers<[1], [0], [0], [1], [0, 0, 1, 1], [], []>} : vector<1x32xbf16>, vector<32x128xbf16>, vector<1x128xf32> -> vector<1x128xf32>
    %327 = arith.addf %326, %324 : vector<1x128xf32>
    %328 = arith.negf %327 : vector<1x128xf32>
    %329 = math.exp %328 : vector<1x128xf32>
    %cst_161 = arith.constant 1.000000e+00 : f32
    %330 = vector.broadcast %cst_161 : f32 to vector<1x128xf32>
    %331 = arith.addf %330, %329 : vector<1x128xf32>
    %332 = arith.divf %330, %331 : vector<1x128xf32>
    %c0_162 = arith.constant 0 : index
    %c0_163 = arith.constant 0 : index
    %c0_164 = arith.constant 0 : index
    %333 = vector.load %arg21[%c0_162, %c0_163, %c0_164] : memref<1x1x128xf32, #tpu.memory_space<vmem>>, vector<1x1x128xf32>
    %334 = vector.shape_cast %333 : vector<1x1x128xf32> to vector<1x128xf32>
    %335 = vector.shape_cast %332 : vector<1x128xf32> to vector<1x1x128xf32>
    tpu.vector_store %arg21[%c0_162, %c0_163, %c0_164], %335 {strides = array<i32>} : memref<1x1x128xf32, #tpu.memory_space<vmem>>, vector<1x1x128xf32>,
    return
  }
  func.func @transform_0(%arg0: i32) -> (i32, i32, i32) {
    %c0_i32 = arith.constant 0 : i32
    %c0_i32_0 = arith.constant 0 : i32
    %c0_i32_1 = arith.constant 0 : i32
    return %arg0, %c0_i32, %c0_i32_0 : i32, i32, i32
  }
  func.func @transform_1(%arg0: i32) -> (i32, i32, i32) {
    %c0_i32 = arith.constant 0 : i32
    %c0_i32_0 = arith.constant 0 : i32
    %c0_i32_1 = arith.constant 0 : i32
    return %arg0, %c0_i32, %c0_i32_0 : i32, i32, i32
  }
  func.func @transform_2(%arg0: i32) -> (i32, i32) {
    %c0_i32 = arith.constant 0 : i32
    %c0_i32_0 = arith.constant 0 : i32
    %c0_i32_1 = arith.constant 0 : i32
    return %c0_i32, %c0_i32_0 : i32, i32
  }
  func.func @transform_3(%arg0: i32) -> (i32, i32) {
    %c0_i32 = arith.constant 0 : i32
    %c0_i32_0 = arith.constant 0 : i32
    %c0_i32_1 = arith.constant 0 : i32
    return %c0_i32, %c0_i32_0 : i32, i32
  }
  func.func @transform_4(%arg0: i32) -> (i32, i32, i32) {
    %c0_i32 = arith.constant 0 : i32
    %c0_i32_0 = arith.constant 0 : i32
    %c0_i32_1 = arith.constant 0 : i32
    %c0_i32_2 = arith.constant 0 : i32
    return %c0_i32, %c0_i32_0, %c0_i32_1 : i32, i32, i32
  }
  func.func @transform_5(%arg0: i32) -> (i32, i32, i32) {
    %c0_i32 = arith.constant 0 : i32
    %c0_i32_0 = arith.constant 0 : i32
    %c0_i32_1 = arith.constant 0 : i32
    %c0_i32_2 = arith.constant 0 : i32
    return %c0_i32, %c0_i32_0, %c0_i32_1 : i32, i32, i32
  }
  func.func @transform_6(%arg0: i32) -> (i32, i32, i32) {
    %c0_i32 = arith.constant 0 : i32
    %c0_i32_0 = arith.constant 0 : i32
    %c0_i32_1 = arith.constant 0 : i32
    %c0_i32_2 = arith.constant 0 : i32
    return %c0_i32, %c0_i32_0, %c0_i32_1 : i32, i32, i32
  }
  func.func @transform_7(%arg0: i32) -> (i32, i32, i32) {
    %c0_i32 = arith.constant 0 : i32
    %c0_i32_0 = arith.constant 0 : i32
    %c0_i32_1 = arith.constant 0 : i32
    %c0_i32_2 = arith.constant 0 : i32
    return %c0_i32, %c0_i32_0, %c0_i32_1 : i32, i32, i32
  }
  func.func @transform_8(%arg0: i32) -> (i32, i32, i32) {
    %c0_i32 = arith.constant 0 : i32
    %c0_i32_0 = arith.constant 0 : i32
    %c0_i32_1 = arith.constant 0 : i32
    %c0_i32_2 = arith.constant 0 : i32
    return %c0_i32, %c0_i32_0, %c0_i32_1 : i32, i32, i32
  }
  func.func @transform_9(%arg0: i32) -> (i32, i32, i32) {
    %c0_i32 = arith.constant 0 : i32
    %c0_i32_0 = arith.constant 0 : i32
    %c0_i32_1 = arith.constant 0 : i32
    %c0_i32_2 = arith.constant 0 : i32
    return %c0_i32, %c0_i32_0, %c0_i32_1 : i32, i32, i32
  }
  func.func @transform_10(%arg0: i32) -> (i32, i32, i32) {
    %c0_i32 = arith.constant 0 : i32
    %c0_i32_0 = arith.constant 0 : i32
    %c0_i32_1 = arith.constant 0 : i32
    %c0_i32_2 = arith.constant 0 : i32
    return %c0_i32, %c0_i32_0, %c0_i32_1 : i32, i32, i32
  }
  func.func @transform_11(%arg0: i32) -> (i32, i32, i32) {
    %c0_i32 = arith.constant 0 : i32
    %c0_i32_0 = arith.constant 0 : i32
    %c0_i32_1 = arith.constant 0 : i32
    %c0_i32_2 = arith.constant 0 : i32
    return %c0_i32, %c0_i32_0, %c0_i32_1 : i32, i32, i32
  }
  func.func @transform_12(%arg0: i32) -> (i32, i32, i32) {
    %c0_i32 = arith.constant 0 : i32
    %c0_i32_0 = arith.constant 0 : i32
    %c0_i32_1 = arith.constant 0 : i32
    %c0_i32_2 = arith.constant 0 : i32
    return %c0_i32, %c0_i32_0, %c0_i32_1 : i32, i32, i32
  }
  func.func @transform_13(%arg0: i32) -> (i32, i32, i32) {
    %c0_i32 = arith.constant 0 : i32
    %c0_i32_0 = arith.constant 0 : i32
    %c0_i32_1 = arith.constant 0 : i32
    %c0_i32_2 = arith.constant 0 : i32
    return %c0_i32, %c0_i32_0, %c0_i32_1 : i32, i32, i32
  }
  func.func @transform_14(%arg0: i32) -> (i32, i32, i32) {
    %c0_i32 = arith.constant 0 : i32
    %c0_i32_0 = arith.constant 0 : i32
    %c0_i32_1 = arith.constant 0 : i32
    %c0_i32_2 = arith.constant 0 : i32
    return %c0_i32, %c0_i32_0, %c0_i32_1 : i32, i32, i32
  }
  func.func @transform_15(%arg0: i32) -> (i32, i32, i32) {
    %c0_i32 = arith.constant 0 : i32
    %c0_i32_0 = arith.constant 0 : i32
    %c0_i32_1 = arith.constant 0 : i32
    %c0_i32_2 = arith.constant 0 : i32
    return %c0_i32, %c0_i32_0, %c0_i32_1 : i32, i32, i32
  }
  func.func @transform_16(%arg0: i32) -> (i32, i32) {
    %c0_i32 = arith.constant 0 : i32
    %c0_i32_0 = arith.constant 0 : i32
    %c0_i32_1 = arith.constant 0 : i32
    return %c0_i32, %c0_i32_0 : i32, i32
  }
  func.func @transform_17(%arg0: i32) -> (i32, i32) {
    %c0_i32 = arith.constant 0 : i32
    %c0_i32_0 = arith.constant 0 : i32
    %c0_i32_1 = arith.constant 0 : i32
    return %c0_i32, %c0_i32_0 : i32, i32
  }
  func.func @transform_18(%arg0: i32) -> (i32, i32) {
    %c0_i32 = arith.constant 0 : i32
    %c0_i32_0 = arith.constant 0 : i32
    %c0_i32_1 = arith.constant 0 : i32
    return %c0_i32, %c0_i32_0 : i32, i32
  }
  func.func @transform_19(%arg0: i32) -> (i32, i32) {
    %c0_i32 = arith.constant 0 : i32
    %c0_i32_0 = arith.constant 0 : i32
    %c0_i32_1 = arith.constant 0 : i32
    return %c0_i32, %c0_i32_0 : i32, i32
  }
  func.func @transform_20(%arg0: i32) -> (i32, i32, i32) {
    %c0_i32 = arith.constant 0 : i32
    %c0_i32_0 = arith.constant 0 : i32
    %c0_i32_1 = arith.constant 0 : i32
    return %arg0, %c0_i32, %c0_i32_0 : i32, i32, i32
  }
}

</mosaic_0001>

<bundles_post_ra>
// kernel: dre_forward.1
= control target key start
LH: loop header
LB: loop body
LE: loop exit
PB: predicated region body
PF: predicated region fallthrough
CT: control target
= control target key end

     0   :  { %s3022_s0 = inlined_call_operand.vmem [shape: f32[2,8,32], index: 0, kind: input, shape index: {}]   ;;  %s3023_s1 = inlined_call_operand.vmem [shape: f32[2,1,8], index: 1, kind: input, shape index: {}]   ;;  %s3024_s2 = inlined_call_operand.vmem [shape: f32[1,32], index: 2, kind: input, shape index: {}]   ;;  %s3025_s3 = inlined_call_operand.vmem [shape: f32[1,32], index: 3, kind: input, shape index: {}]   ;;  %s3026_s4 = inlined_call_operand.vmem [shape: bf16[2,32,96], index: 4, kind: input, shape index: {}]   ;;  %s3027_s5 = inlined_call_operand.vmem [shape: f32[2,1,96], index: 5, kind: input, shape index: {}]   ;;  %s3028_s6 = inlined_call_operand.vmem [shape: bf16[2,32,32], index: 6, kind: input, shape index: {}]   ;;  %s3029_s7 = inlined_call_operand.vmem [shape: f32[2,1,32], index: 7, kind: input, shape index: {}]   ;;  %s3030_s8 = inlined_call_operand.vmem [shape: f32[2,1,32], index: 8, kind: input, shape index: {}]   ;;  %s3031_s9 = inlined_call_operand.vmem [shape: f32[2,1,32], index: 9, kind: input, shape index: {}]   ;;  %s3032_s10 = inlined_call_operand.vmem [shape: bf16[2,32,64], index: 10, kind: input, shape index: {}]   ;;  %s3033_s11 = inlined_call_operand.vmem [shape: f32[2,1,64], index: 11, kind: input, shape index: {}]   ;;  %s3034_s12 = inlined_call_operand.vmem [shape: bf16[2,64,32], index: 12, kind: input, shape index: {}]   ;;  %s3035_s13 = inlined_call_operand.vmem [shape: f32[2,1,32], index: 13, kind: input, shape index: {}]   ;;  %s3036_s14 = inlined_call_operand.vmem [shape: f32[2,1,32], index: 14, kind: input, shape index: {}]   ;;  %s3037_s15 = inlined_call_operand.vmem [shape: f32[2,1,32], index: 15, kind: input, shape index: {}]   ;;  %s3038_s16 = inlined_call_operand.vmem [shape: bf16[32,32], index: 16, kind: input, shape index: {}]   ;;  %s3039_s17 = inlined_call_operand.vmem [shape: f32[1,32], index: 17, kind: input, shape index: {}]   ;;  %s3040_s18 = inlined_call_operand.vmem [shape: bf16[32,128], index: 18, kind: input, shape index: {}]   ;;  %s3041_s19 = inlined_call_operand.vmem [shape: f32[1,128], index: 19, kind: input, shape index: {}]   ;;  %s3042_s20 = inlined_call_operand.hbm [shape: f32[2,1,128], index: 20, kind: output, shape index: {}]  }
   0x1   :  { %3054 = sst [smem:[#allocation10_spill]] %s3022_s0 }
   0x2   :  { %3055 = sst [smem:[#allocation11_spill]] %s3023_s1 }
   0x3   :  { %3056 = sst [smem:[#allocation12_spill]] %s3024_s2 }
   0x4   :  { %3057 = sst [smem:[#allocation13_spill]] %s3025_s3 }
   0x5   :  { %3058 = sst [smem:[#allocation14_spill]] %s3026_s4 }
   0x6   :  { %3059 = sst [smem:[#allocation15_spill]] %s3027_s5 }
   0x7   :  { %25 = vsyncpa [#allocation4], 0 }
   0x8   :  { %27 = vsyncpa [#allocation4 + $0x1], 0  ;;  %s2639_s1 = smov 0   ;;  %s2641_s22 = smov 0  }
   0x9   :  { %s2643_s23 = smov 0   ;;  %s2645_s24 = smov 0  }
   0xa LB: > { %3060 = sst [smem:[#allocation6_spill]] %s2519_s23  ;;  %s2660_s2 = sadd.s32 4294967295, %s2523_s24   ;;  %s2523_s24 = sphi %s2645_s24, %s3078_s24   ;;  %s2519_s23 = sphi %s2643_s23, %s3080_s23   ;;  %s2515_s22 = sphi %s2641_s22, %s3082_s22   ;;  %s2511_s1 = sphi %s2639_s1, %s3081_s1  }
   0xb   : > { %s2070_s25 = sadd.s32 4294967294, %s2523_s24   ;;  %s2664_s3 = sadd.s32 1, %s2523_s24  }
   0xc   : > { %3061 = sst [smem:[#allocation7_spill]] %s2664_s3  ;;  %s470_s26 = sadd.s32 1, %s2519_s23 }
   0xd   : > { %s467_s27 = ssub.s32 %s2523_s24, %s2664_s3  ;;  %p480_p0 = scmp.ne.s32.totalorder %s2519_s23, %s2515_s22 }
   0xe   : > { %p468_p1 = scmp.eq.s32.totalorder %s467_s27, 0  ;;  %p481_p2 = scmp.eq.s32.totalorder %s2660_s2, 1 }
   0xf   : > { %p486_p3 = scmp.ne.s32.totalorder %s2515_s22, %s2511_s1  ;;  %p487_p4 = scmp.eq.s32.totalorder %s2070_s25, 1 }
  0x10   : > { %s2675_s28 = scalar_select %p468_p1, %s2519_s23, %s470_s26  }
  0x11   : > { %p2677_p5 = por %p481_p2, %p480_p0  ;;  %p2681_p6 = por %p487_p4, %p486_p3 }
  0x12   : > { %3062 = sst [smem:[#allocation8_spill]] %s2675_s28  ;;  %p2073_p7 = scmp.ge.s32.totalorder %s2523_s24, 1 }
  0x13   : > { %s3064_s29 = scalar_select %p2681_p6, 1, 0 }
  0x14   : > { %p572_p8 = scmp.lt.s32.totalorder %s2523_s24, 3 }
  0x15   : > { %3065 = sst [smem:[#allocation9_spill]] %s3064_s29 }
  0x16   : > { %p573_p9 = pnand %p2073_p7, %p572_p8 }
  0x17   : > { %p631_p10 = scmp.lt.s32.totalorder (!%p573_p9), %s2660_s2, 1  ;;  %vm642_vm0 = vcmask (!%p573_p9), 261120   ;;  %s3066_s26 = sld [smem:[#allocation10_spill]] (!%p573_p9)  ;;  %v2525_v8 = vmov (!%p573_p9), 0.0   ;;  %vm2526_vm1 = vmmov (!%p573_p9), 0   ;;  %vm743_vm2 = vcmask (!%p573_p9), 130048  }
  0x18   : > { %576 = sbr.rel (%p573_p9) target bundleno = 5871 (0x16ef), region = 100  ;;  %s3067_s3 = sld [smem:[#allocation14_spill]] (!%p573_p9)  ;;  %2218 = vmatprep.subr.bf16.mxu0 (!%p573_p9), %v2525_v8  ;;  %2226 = vmatprep.subr.bf16.mxu1 (!%p573_p9), %v2525_v8  ;;  %vm798_vm3 = vcmask (!%p573_p9), 64512   ;;  %vm816_vm4 = vcmask (!%p573_p9), 1043456   ;;  %vm977_vm5 = vcmask (!%p573_p9), 261248   ;;  %vm1193_vm6 = vcmask (!%p573_p9), 523264  }
  0x19   : > { %2222 = vmatprep.mubr.msk.bf16.mxu0 (!%p573_p9), %vm2526_vm1, %v2525_v8  ;;  %2228 = vmatprep.mubr.msk.bf16.mxu1 (!%p573_p9), %vm2526_vm1, %v2525_v8  ;;  %s3068_s25 = sld [smem:[#allocation12_spill]] (!%p573_p9)  ;;  %s3070_s5 = sld [smem:[#allocation15_spill]] (!%p573_p9) }
  0x1a   : > { %s3051_s23 = smov (!%p573_p9), 112   ;;  %s3052_s28 = smov (!%p573_p9), 96  }
  0x1b   : > { %s3050_s21 = smov (!%p573_p9), 64   ;;  %s3075_s29 = smov (!%p573_p9), 48  }
  0x1e   : > { %v2401_v7 = vld [vmem:[%s3067_s3] sm:$0xff] (!%p573_p9)   ;;  %v2402_v9 = vld [vmem:[%s3067_s3 + $0x8] sm:$0xff] (!%p573_p9)  }
  0x1f   : > { %s2689_s30 = scalar_select %p631_p10, %s2660_s2, 1  ;;  %2219 = vmatpush3.bf16.msra.mxu0 %v2401_v7  ;;  %v2075_v14 = vld [vmem:[%s3068_s25] ss:$0 sm:$0xff] }
  0x20   : > { %2220 = vmatprep.subr.bf16.mxu0 %v2525_v8  ;;  %v2077_v20 = vld [vmem:[%s3070_s5] ss:$0 sm:$0xff]  ;;  %s2529_s25 = smov 80  }
  0x21   : > { %s2074_s0 = sshll.u32 %s2689_s30, 3 }
  0x22   : > { %s634_s27 = scalar_lea.vmem %s3066_s26, %s2074_s0  ;;  %s3069_s0 = sld [smem:[#allocation13_spill]] }
  0x23   : > { %v639_v0 = vld [vmem:[%s634_s27] sm:$0xff]  ;;  %2221 = vmatpush3.bf16.msra.mxu0 %v2402_v9  ;;  %s3071_s27 = sld [smem:[#allocation11_spill]] }
  0x24   : > { %v643_v1 = vsel %vm642_vm0, %v639_v0, 0.0  ;;  %2232 = vmatprep.subr.bf16.mxu0 %v2525_v8 }
  0x25   : > { %644 = vadd.xlane.f32.xlu0 %v643_v1 }
  0x28   : > { %v2076_v16 = vld [vmem:[%s3069_s0] ss:$0 sm:$0xff] }
  0x29   : > { %s637_s0 = scalar_lea.vmem %s3071_s27, %s2689_s30  ;;  %s3048_s30 = smov 48  }
  0x2a   : > { %v2744_v32 = vld [vmem:[%s637_s0] ss:$0 sm:$0xff]  ;;  %s3072_s27 = smov 96   ;;  %s3073_s0 = smov 112  }
  0xb2   : > { %v645_v2 = vpop.xlane.xlu0 %644 }
  0xb3   : > { %v647_v3 = vmul.f32 0.03125, %v645_v2 }
  0xb5   : > { %v648_v4 = vsub.f32 %v639_v0, %v647_v3 }
  0xb7   : > { %v649_v5 = vmul.f32 %v648_v4, %v648_v4 }
  0xb9   : > { %v650_v6 = vsel %vm642_vm0, %v649_v5, 0.0  ;;  %v2403_v5 = vld [vmem:[%s3028_s6] sm:$0xff]  }
  0xba   : > { %651 = vadd.xlane.f32.xlu0 %v650_v6  ;;  %v2404_v6 = vld [vmem:[%s3028_s6 + $0x8] sm:$0xff]  }
 0x147   : > { %v652_v10 = vpop.xlane.xlu0 %651 }
 0x148   : > { %v653_v11 = vmul.f32 0.03125, %v652_v10 }
 0x14a   : > { %v654_v12 = vadd.f32 1e-12, %v653_v11 }
 0x14c   : > { %2425 = vrsqrt.f32 %v654_v12 }
 0x156   : > { %v2426_v13 = vpop.eup %2425 }
 0x157   : > { %v656_v15 = vmul.f32 %v2426_v13, %v648_v4 }
 0x159   : > { %v663_v17 = vmul.f32 %v2075_v14, %v656_v15 }
 0x15b   : > { %v2717_v18 = vadd.f32 %v2076_v16, %v663_v17 }
 0x15d   : > { %v677_v19 = vpack.c.bf16 %v2717_v18, %v2717_v18 }
 0x15f   : > { %2223 = vmatmul.mubr.msk.bf16.vlgmr.msra.gmra.mrb[0].mxu0 %vm642_vm0, %v677_v19 }
 0x160   : > { %2234 = vmatprep.mubr.msk.bf16.mxu0 %vm2526_vm1, %v2525_v8 }
 0x232   : > { %v733_v21 = vpop.f32.mrb[0].mxu0 }
 0x233   : > { %v734_v22 = vadd.f32 %v2077_v20, %v733_v21  ;;  %v2224_v23 = vpop.f32.mrb[1].mxu0  ;;  %v2086_v20 = vld [vmem:[%s3029_s7] ss:$0 sm:$0xff] }
 0x234   : > { %v736_v24 = vpop.f32.mrb[2].mxu0 }
 0x235   : > { %v739_v25 = vpack.c.bf16 %v734_v22, %v734_v22  ;;  %v2225_v26 = vpop.f32.mrb[3].mxu0 }
 0x237   : > { %861 = vrot.lane.b32.xlu0 %v739_v25, %s3051_s23  ;;  %741 = vrot.lane.b32.xlu1 %v739_v25, %s3052_s28 }
 0x23b   : > { %863 = vrot.lane.b32.xlu1 %v739_v25, %s2529_s25 }
 0x2a9   : > { %v742_v27 = vpop.permute.xlu1 %741  ;;  %v862_v31 = vpop.permute.xlu0 %861 }
 0x2aa   : > { %v748_v28 = vsel %vm743_vm2, %v742_v27, 0 }
 0x2ab   : > { %2227 = vmatpush3.bf16.xpose.msra.mxu1 %v748_v28 }
 0x2ac   : > { %2238 = vmatprep.subr.bf16.mxu1 %v2525_v8 }
 0x2ad   : > { %v864_v29 = vpop.permute.xlu1 %863 }
 0x2ae   : > { %v869_v30 = vsel %vm743_vm2, %v864_v29, 0 }
 0x2b2   : > { %2229 = vmatmul.mubr.msk.bf16.vlgmr.msra.gmra.mrb[0].mxu1 %vm743_vm2, %v739_v25 }
 0x2b3   : > { %2239 = vmatpush3.bf16.xpose.msra.mxu1 %v869_v30  ;;  %2240 = vmatprep.mubr.msk.bf16.mxu1 %vm2526_vm1, %v2525_v8 }
 0x2b4   : > { %2250 = vmatprep.subr.bf16.mxu1 %v2525_v8 }
 0x2ba   : > { %2241 = vmatmul.mubr.msk.bf16.vlgmr.msra.gmra.mrb[4].mxu1 %vm743_vm2, %v862_v31 }
 0x2bb   : > { %2254 = vmatprep.mubr.msk.bf16.mxu1 %vm2526_vm1, %v2525_v8  ;;  %2251 = vmatpush3.bf16.msra.mxu1 %v2403_v5 }
 0x2bc   : > { %2252 = vmatprep.subr.bf16.mxu1 %v2525_v8 }
 0x2bf   : > { %2253 = vmatpush3.bf16.msra.mxu1 %v2404_v6 }
 0x2c0   : > { %2266 = vmatprep.subr.bf16.mxu1 %v2525_v8 }
 0x385   : > { %v784_v33 = vpop.f32.mrb[0].mxu1 }
 0x386   : > { %v790_v34 = vmul.f32 0.25, %v784_v33  ;;  %v2230_v35 = vpop.f32.mrb[1].mxu1 }
 0x387   : > { %v787_v36 = vpop.f32.mrb[2].mxu1 }
 0x388   : > { %v2231_v37 = vpop.f32.mrb[3].mxu1  ;;  %v797_v38 = vadd.f32 %v2744_v32, %v790_v34  ;;  %v2405_v34 = vld [vmem:[%s3032_s10] sm:$0xff]  }
 0x38a   : > { %v799_v39 = vsel %vm798_vm3, %v797_v38, -inf }
 0x38b   : > { %800 = vmax.xlane.f32.xlu1 %v799_v39  ;;  %v2090_v39 = vld [vmem:[%s3030_s8] ss:$0 sm:$0xff] }
 0x38d   : > { %v905_v40 = vpop.f32.mrb[4].mxu1 }
 0x38e   : > { %v911_v41 = vmul.f32 0.25, %v905_v40  ;;  %v2242_v42 = vpop.f32.mrb[5].mxu1 }
 0x38f   : > { %v908_v43 = vpop.f32.mrb[6].mxu1 }
 0x390   : > { %v2243_v44 = vpop.f32.mrb[7].mxu1  ;;  %v912_v45 = vadd.f32 %v2744_v32, %v911_v41  ;;  %v2091_v41 = vld [vmem:[%s3031_s9] ss:$0 sm:$0xff] }
 0x392   : > { %v913_v46 = vsel %vm798_vm3, %v912_v45, -inf }
 0x393   : > { %914 = vmax.xlane.f32.xlu0 %v913_v46  ;;  %v2408_v46 = vld [vmem:[%s3034_s12 + $0x8] sm:$0xff]  }
 0x3a9   : > { %925 = vrot.lane.b32.xlu0 %v739_v25, %s3048_s30  ;;  %s3049_s30 = smov 16  }
 0x418   : > { %v801_v47 = vpop.xlane.xlu1 %800 }
 0x419   : > { %v802_v48 = vsub.f32 %v797_v38, %v801_v47  ;;  %v2409_v47 = vld [vmem:[%s3034_s12 + $0x10] sm:$0xff]  }
 0x41b   : > { %v803_v49 = vmul.f32 1.442695, %v802_v48  ;;  %v2410_v48 = vld [vmem:[%s3034_s12 + $0x18] sm:$0xff]  }
 0x41d   : > { %2427 = vpow2.f32 %v803_v49  ;;  %v2092_v49 = vld [vmem:[%s3033_s11] ss:$0 sm:$0xff] }
 0x420   : > { %v915_v50 = vpop.xlane.xlu0 %914 }
 0x421   : > { %v916_v51 = vsub.f32 %v912_v45, %v915_v50  ;;  %v2407_v45 = vld [vmem:[%s3034_s12] sm:$0xff]  }
 0x423   : > { %v917_v52 = vmul.f32 1.442695, %v916_v51 }
 0x424   : > { %v926_v63 = vpop.permute.xlu0 %925 }
 0x425   : > { %2429 = vpow2.f32 %v917_v52  ;;  %v931_v1 = vsel %vm816_vm4, %v926_v63, 0 }
 0x427   : > { %v2428_v53 = vpop.eup %2427 }
 0x428   : > { %v805_v54 = vsel %vm798_vm3, %v2428_v53, 0.0 }
 0x429   : > { %806 = vadd.xlane.f32.xlu1 %v805_v54 }
 0x42f   : > { %v2430_v55 = vpop.eup %2429 }
 0x430   : > { %v919_v56 = vsel %vm798_vm3, %v2430_v55, 0.0 }
 0x431   : > { %920 = vadd.xlane.f32.xlu1 %v919_v56 }
 0x442   : > { %811 = vrot.lane.b32.xlu1 %v739_v25, %s3050_s21  ;;  %s3076_s21 = smov 16  }
 0x4b6   : > { %v807_v57 = vpop.xlane.xlu1 %806 }
 0x4b7   : > { %2431 = vrcp.f32 %v807_v57 }
 0x4be   : > { %v921_v58 = vpop.xlane.xlu1 %920 }
 0x4bf   : > { %2433 = vrcp.f32 %v921_v58 }
 0x4c1   : > { %v2432_v59 = vpop.eup %2431 }
 0x4c2   : > { %v809_v60 = vmul.f32 %v2432_v59, %v2428_v53  ;;  %v812_v61 = vpop.permute.xlu1 %811 }
 0x4c3   : > { %v818_v62 = vsel %vm816_vm4, %v812_v61, 0 }
 0x4c4   : > { %2233 = vmatpush3.bf16.msra.mxu0 %v818_v62  ;;  %v810_v0 = vpack.c.bf16 %v809_v60, %v809_v60 }
 0x4c5   : > { %2244 = vmatprep.subr.bf16.mxu0 %v2525_v8 }
 0x4c7   : > { %2235 = vmatmul.mubr.msk.bf16.vlgmr.msra.gmra.mrb[4].mxu0 %vm798_vm3, %v810_v0 }
 0x4c8   : > { %2245 = vmatpush3.bf16.msra.mxu0 %v931_v1  ;;  %2246 = vmatprep.mubr.msk.bf16.mxu0 %vm2526_vm1, %v2525_v8  ;;  %v2096_v1 = vld [vmem:[%s3035_s13] ss:$0 sm:$0xff] }
 0x4c9   : > { %v2434_v2 = vpop.eup %2433  ;;  %2258 = vmatprep.subr.bf16.mxu0 %v2525_v8 }
 0x4ca   : > { %v923_v3 = vmul.f32 %v2434_v2, %v2430_v55 }
 0x4cc   : > { %v924_v4 = vpack.c.bf16 %v923_v3, %v923_v3 }
 0x4cf   : > { %2247 = vmatmul.mubr.msk.bf16.vlgmr.msra.gmra.mrb[8].mxu0 %vm798_vm3, %v924_v4 }
 0x4d0   : > { %2262 = vmatprep.mubr.msk.bf16.mxu0 %vm2526_vm1, %v2525_v8  ;;  %2259 = vmatpush3.bf16.msra.mxu0 %v2405_v34 }
 0x4d1   : > { %2260 = vmatprep.subr.bf16.mxu0 %v2525_v8 }
 0x59a   : > { %v854_v7 = vpop.f32.mrb[4].mxu0 }
 0x59b   : > { %860 = vst.msk [vmem:[#allocation2] sm:$0xff] %vm743_vm2, %v854_v7  ;;  %v2236_v9 = vpop.f32.mrb[5].mxu0 }
 0x59c   : > { %v857_v10 = vpop.f32.mrb[6].mxu0 }
 0x59d   : > { %v2237_v11 = vpop.f32.mrb[7].mxu0 }
 0x5a2   : > { %v967_v12 = vpop.f32.mrb[8].mxu0 }
 0x5a3   : > { %974 = vrot.lane.b32.xlu1 %v967_v12, %s3049_s30  ;;  %v2248_v13 = vpop.f32.mrb[9].mxu0 }
 0x5a4   : > { %v970_v14 = vpop.f32.mrb[10].mxu0 }
 0x5a5   : > { %v2249_v15 = vpop.f32.mrb[11].mxu0 }
 0x5a6   : > { %v2411_v15 = vld [vmem:[%s3067_s3 + $0x10] sm:$0xff]  }
 0x615   : > { %v975_v16 = vpop.permute.xlu1 %974 }
 0x616   : > { %978 = vst.msk [vmem:[#allocation2] sm:$0xff] %vm977_vm5, %v975_v16  ;;  %v2412_v16 = vld [vmem:[%s3067_s3 + $0x18] sm:$0xff]  }
 0x61d   : > { %v979_v17 = vld [vmem:[#allocation2] sm:$0xff] }
 0x61e   : > { %v985_v19 = vpack.c.bf16 %v979_v17, %v979_v17 }
 0x620   : > { %2255 = vmatmul.mubr.msk.bf16.vlgmr.msra.gmra.mrb[8].mxu1 %vm642_vm0, %v985_v19 }
 0x621   : > { %2274 = vmatprep.mubr.msk.bf16.mxu1 %vm2526_vm1, %v2525_v8  ;;  %2267 = vmatpush3.bf16.msra.mxu1 %v2407_v45 }
 0x622   : > { %2268 = vmatprep.subr.bf16.mxu1 %v2525_v8 }
 0x625   : > { %2269 = vmatpush3.bf16.msra.mxu1 %v2408_v46 }
 0x626   : > { %2270 = vmatprep.subr.bf16.mxu1 %v2525_v8 }
 0x629   : > { %2271 = vmatpush3.bf16.msra.mxu1 %v2409_v47 }
 0x62a   : > { %2272 = vmatprep.subr.bf16.mxu1 %v2525_v8 }
 0x62d   : > { %2273 = vmatpush3.bf16.msra.mxu1 %v2410_v48 }
 0x62e   : > { %2292 = vmatprep.subr.bf16.mxu1 %v2525_v8 }
 0x6f3   : > { %v1041_v21 = vpop.f32.mrb[8].mxu1 }
 0x6f4   : > { %v1042_v22 = vadd.f32 %v2086_v20, %v1041_v21  ;;  %v2256_v23 = vpop.f32.mrb[9].mxu1 }
 0x6f5   : > { %v1044_v24 = vpop.f32.mrb[10].mxu1 }
 0x6f6   : > { %v2257_v25 = vpop.f32.mrb[11].mxu1  ;;  %v1047_v26 = vadd.f32 %v1042_v22, %v2717_v18  ;;  %v2406_v18 = vld [vmem:[%s3032_s10 + $0x8] sm:$0xff]   ;;  %v2102_v22 = vld [vmem:[%s3036_s14] ss:$0 sm:$0xff] }
 0x6f7   : > { %2261 = vmatpush3.bf16.msra.mxu0 %v2406_v18  ;;  %v2103_v24 = vld [vmem:[%s3037_s15] ss:$0 sm:$0xff] }
 0x6f8   : > { %v1050_v27 = vsel %vm642_vm0, %v1047_v26, 0.0  ;;  %2278 = vmatprep.subr.bf16.mxu0 %v2525_v8 }
 0x6f9   : > { %1051 = vadd.xlane.f32.xlu1 %v1050_v27 }
 0x786   : > { %v1052_v28 = vpop.xlane.xlu1 %1051 }
 0x787   : > { %v1053_v29 = vmul.f32 0.03125, %v1052_v28  ;;  %v2109_v28 = vld [vmem:[%s3070_s5 + $0x1] ss:$0 sm:$0xff] }
 0x789   : > { %v1054_v30 = vsub.f32 %v1047_v26, %v1053_v29 }
 0x78b   : > { %v1055_v31 = vmul.f32 %v1054_v30, %v1054_v30 }
 0x78d   : > { %v1056_v33 = vsel %vm642_vm0, %v1055_v31, 0.0 }
 0x78e   : > { %1057 = vadd.xlane.f32.xlu0 %v1056_v33 }
 0x81b   : > { %v1058_v35 = vpop.xlane.xlu0 %1057 }
 0x81c   : > { %v1059_v36 = vmul.f32 0.03125, %v1058_v35 }
 0x81e   : > { %v1060_v37 = vadd.f32 1e-12, %v1059_v36 }
 0x820   : > { %2435 = vrsqrt.f32 %v1060_v37 }
 0x82a   : > { %v2436_v38 = vpop.eup %2435 }
 0x82b   : > { %v1062_v40 = vmul.f32 %v2436_v38, %v1054_v30 }
 0x82d   : > { %v1069_v42 = vmul.f32 %v2090_v39, %v1062_v40 }
 0x82f   : > { %v1076_v43 = vadd.f32 %v2091_v41, %v1069_v42 }
 0x831   : > { %v1082_v44 = vpack.c.bf16 %v1076_v43, %v1076_v43 }
 0x833   : > { %2263 = vmatmul.mubr.msk.bf16.vlgmr.msra.gmra.mrb[12].mxu0 %vm642_vm0, %v1082_v44 }
 0x834   : > { %2282 = vmatprep.mubr.msk.bf16.mxu0 %vm2526_vm1, %v2525_v8  ;;  %2279 = vmatpush3.bf16.msra.mxu0 %v2411_v15 }
 0x835   : > { %2280 = vmatprep.subr.bf16.mxu0 %v2525_v8 }
 0x838   : > { %2281 = vmatpush3.bf16.msra.mxu0 %v2412_v16 }
 0x839   : > { %2286 = vmatprep.subr.bf16.mxu0 %v2525_v8 }
 0x906   : > { %v1138_v50 = vpop.f32.mrb[12].mxu0 }
 0x907   : > { %v1139_v51 = vadd.f32 %v2092_v49, %v1138_v50  ;;  %v2264_v52 = vpop.f32.mrb[13].mxu0 }
 0x908   : > { %v1141_v53 = vpop.f32.mrb[14].mxu0 }
 0x909   : > { %v1145_v54 = vmul.f32 0.044715, %v1139_v51  ;;  %v2265_v55 = vpop.f32.mrb[15].mxu0  ;;  %v1144_v61 = vmul.f32 0.5, %v1139_v51 }
 0x90b   : > { %v1146_v56 = vmul.f32 %v1145_v54, %v1139_v51 }
 0x90d   : > { %v1147_v57 = vmul.f32 %v1146_v56, %v1139_v51 }
 0x90f   : > { %v1148_v58 = vadd.f32 %v1147_v57, %v1139_v51 }
 0x911   : > { %v1149_v59 = vmul.f32 0.7978845, %v1148_v58 }
 0x913   : > { %2437 = vtanh.f32 %v1149_v59 }
 0x91d   : > { %v2438_v60 = vpop.eup %2437 }
 0x91e   : > { %v1151_v62 = vadd.f32 1.0, %v2438_v60 }
 0x920   : > { %v1152_v63 = vmul.f32 %v1151_v62, %v1144_v61 }
 0x922   : > { %v1162_v0 = vpack.c.bf16 %v1152_v63, %v1152_v63 }
 0x924   : > { %2275 = vmatmul.mubr.msk.bf16.vlgmr.msra.gmra.mrb[12].mxu1 %vm1193_vm6, %v1162_v0 }
 0x925   : > { %2294 = vmatprep.mubr.msk.bf16.mxu1 %vm2526_vm1, %v2525_v8 }
 0x9f7   : > { %v1231_v2 = vpop.f32.mrb[12].mxu1 }
 0x9f8   : > { %v1232_v3 = vadd.f32 %v2096_v1, %v1231_v2  ;;  %v2276_v4 = vpop.f32.mrb[13].mxu1 }
 0x9f9   : > { %v1234_v5 = vpop.f32.mrb[14].mxu1 }
 0x9fa   : > { %v2277_v6 = vpop.f32.mrb[15].mxu1  ;;  %v1237_v7 = vadd.f32 %v1232_v3, %v1076_v43 }
 0x9fc   : > { %v1240_v9 = vsel %vm642_vm0, %v1237_v7, 0.0 }
 0x9fd   : > { %1241 = vadd.xlane.f32.xlu1 %v1240_v9 }
 0xa8a   : > { %v1242_v10 = vpop.xlane.xlu1 %1241 }
 0xa8b   : > { %v1243_v11 = vmul.f32 0.03125, %v1242_v10 }
 0xa8d   : > { %v1244_v12 = vsub.f32 %v1237_v7, %v1243_v11 }
 0xa8f   : > { %v1245_v13 = vmul.f32 %v1244_v12, %v1244_v12 }
 0xa91   : > { %v1246_v14 = vsel %vm642_vm0, %v1245_v13, 0.0  ;;  %v2414_v13 = vld [vmem:[%s3028_s6 + $0x18] sm:$0xff]  }
 0xa92   : > { %1247 = vadd.xlane.f32.xlu1 %v1246_v14 }
 0xb1f   : > { %v1248_v17 = vpop.xlane.xlu1 %1247 }
 0xb20   : > { %v1249_v19 = vmul.f32 0.03125, %v1248_v17 }
 0xb22   : > { %v1250_v20 = vadd.f32 1e-12, %v1249_v19 }
 0xb24   : > { %2439 = vrsqrt.f32 %v1250_v20 }
 0xb2e   : > { %v2440_v21 = vpop.eup %2439 }
 0xb2f   : > { %v1252_v23 = vmul.f32 %v2440_v21, %v1244_v12  ;;  %v2413_v12 = vld [vmem:[%s3028_s6 + $0x10] sm:$0xff]  }
 0xb31   : > { %v1259_v25 = vmul.f32 %v2102_v22, %v1252_v23 }
 0xb33   : > { %v2842_v26 = vadd.f32 %v2103_v24, %v1259_v25 }
 0xb35   : > { %v1274_v27 = vpack.c.bf16 %v2842_v26, %v2842_v26 }
 0xb37   : > { %2283 = vmatmul.mubr.msk.bf16.vlgmr.msra.gmra.mrb[16].mxu0 %vm642_vm0, %v1274_v27  ;;  %v2122_v27 = vld [vmem:[%s3029_s7 + $0x1] ss:$0 sm:$0xff] }
 0xb38   : > { %2288 = vmatprep.mubr.msk.bf16.mxu0 %vm2526_vm1, %v2525_v8 }
 0xc0a   : > { %v1330_v29 = vpop.f32.mrb[16].mxu0 }
 0xc0b   : > { %v1331_v30 = vadd.f32 %v2109_v28, %v1330_v29  ;;  %v2284_v31 = vpop.f32.mrb[17].mxu0 }
 0xc0c   : > { %v1333_v33 = vpop.f32.mrb[18].mxu0 }
 0xc0d   : > { %v1336_v34 = vpack.c.bf16 %v1331_v30, %v1331_v30  ;;  %v2285_v18 = vpop.f32.mrb[19].mxu0 }
 0xc0f   : > { %1451 = vrot.lane.b32.xlu1 %v1336_v34, %s2529_s25  ;;  %1338 = vrot.lane.b32.xlu0 %v1336_v34, %s3072_s27  ;;  %s3074_s25 = smov 64  }
 0xc13   : > { %1449 = vrot.lane.b32.xlu1 %v1336_v34, %s3073_s0 }
 0xc81   : > { %v1339_v35 = vpop.permute.xlu0 %1338  ;;  %v1452_v37 = vpop.permute.xlu1 %1451 }
 0xc82   : > { %v1344_v36 = vsel %vm743_vm2, %v1339_v35, 0  ;;  %v1457_v38 = vsel %vm743_vm2, %v1452_v37, 0 }
 0xc83   : > { %2287 = vmatpush3.bf16.xpose.msra.mxu0 %v1344_v36 }
 0xc84   : > { %2298 = vmatprep.subr.bf16.mxu0 %v2525_v8 }
 0xc85   : > { %v1450_v39 = vpop.permute.xlu1 %1449 }
 0xc8a   : > { %2289 = vmatmul.mubr.msk.bf16.vlgmr.msra.gmra.mrb[20].mxu0 %vm743_vm2, %v1336_v34 }
 0xc8b   : > { %2299 = vmatpush3.bf16.xpose.msra.mxu0 %v1457_v38  ;;  %2300 = vmatprep.mubr.msk.bf16.mxu0 %vm2526_vm1, %v2525_v8 }
 0xc8c   : > { %2310 = vmatprep.subr.bf16.mxu0 %v2525_v8 }
 0xc92   : > { %2301 = vmatmul.mubr.msk.bf16.vlgmr.msra.gmra.mrb[24].mxu0 %vm743_vm2, %v1450_v39 }
 0xc93   : > { %2314 = vmatprep.mubr.msk.bf16.mxu0 %vm2526_vm1, %v2525_v8  ;;  %2311 = vmatpush3.bf16.msra.mxu0 %v2413_v12 }
 0xc94   : > { %2312 = vmatprep.subr.bf16.mxu0 %v2525_v8 }
 0xc97   : > { %2313 = vmatpush3.bf16.msra.mxu0 %v2414_v13 }
 0xc98   : > { %2326 = vmatprep.subr.bf16.mxu0 %v2525_v8 }
 0xd5d   : > { %v1380_v40 = vpop.f32.mrb[20].mxu0 }
 0xd5e   : > { %v1386_v41 = vmul.f32 0.25, %v1380_v40  ;;  %v2290_v42 = vpop.f32.mrb[21].mxu0  ;;  %v2415_v40 = vld [vmem:[%s3032_s10 + $0x10] sm:$0xff]  }
 0xd5f   : > { %v1383_v43 = vpop.f32.mrb[22].mxu0 }
 0xd60   : > { %v2291_v44 = vpop.f32.mrb[23].mxu0  ;;  %v1387_v45 = vadd.f32 %v2744_v32, %v1386_v41  ;;  %v2416_v41 = vld [vmem:[%s3032_s10 + $0x18] sm:$0xff]  }
 0xd62   : > { %v1388_v46 = vsel %vm798_vm3, %v1387_v45, -inf }
 0xd63   : > { %1389 = vmax.xlane.f32.xlu0 %v1388_v46 }
 0xd65   : > { %v1493_v47 = vpop.f32.mrb[24].mxu0 }
 0xd66   : > { %v1499_v48 = vmul.f32 0.25, %v1493_v47  ;;  %v2302_v49 = vpop.f32.mrb[25].mxu0  ;;  %v2129_v47 = vld [vmem:[%s3031_s9 + $0x1] ss:$0 sm:$0xff] }
 0xd67   : > { %v1496_v50 = vpop.f32.mrb[26].mxu0 }
 0xd68   : > { %v2303_v51 = vpop.f32.mrb[27].mxu0  ;;  %v1500_v52 = vadd.f32 %v2744_v32, %v1499_v48 }
 0xd69   : > { %v2417_v51 = vld [vmem:[%s3034_s12 + $0x20] sm:$0xff]  }
 0xd6a   : > { %v1501_v53 = vsel %vm798_vm3, %v1500_v52, -inf }
 0xd6b   : > { %1502 = vmax.xlane.f32.xlu1 %v1501_v53  ;;  %v2419_v53 = vld [vmem:[%s3034_s12 + $0x30] sm:$0xff]  }
 0xd7c   : > { %1400 = vrot.lane.b32.xlu1 %v1336_v34, %s3074_s25  ;;  %s629_s25 = sand.u32 1, %s2515_s22  }
 0xd7d   : > { %s630_s26 = scalar_lea.vmem [#allocation3], %s629_s25  ;;  %s1994_s27 = scalar_lea.sflag [#allocation4], %s629_s25 }
 0xd7e   : > { %s2006_s23 = sshll.u32 %s630_s26, 4  ;;  %s2982_s23 = int_to_ptr.vmem [resolvable:$true] %s2006_s23 }
 0xd7f   : > { %s2461_s0 = scalar_lea.vmem %s2982_s23, 16 }
 0xd80   : > { %p2462_p11 = scmp.ne.s32.totalorder %s2982_s23, %s2461_s0 }
 0xd82   : > { %p2463_p12 = pnand %p2462_p11, %p2677_p5 }
 0xd84   : > { %p2464_p13 = pneg %p2463_p12 }
 0xdf0   : > { %v1390_v54 = vpop.xlane.xlu0 %1389 }
 0xdf1   : > { %v1391_v55 = vsub.f32 %v1387_v45, %v1390_v54  ;;  %v2128_v45 = vld [vmem:[%s3030_s8 + $0x1] ss:$0 sm:$0xff]  ;;  %v2420_v54 = vld [vmem:[%s3034_s12 + $0x38] sm:$0xff]  }
 0xdf3   : > { %v1392_v56 = vmul.f32 1.442695, %v1391_v55  ;;  %v2135_v55 = vld [vmem:[%s3033_s11 + $0x1] ss:$0 sm:$0xff] }
 0xdf5   : > { %2441 = vpow2.f32 %v1392_v56 }
 0xdf8   : > { %v1503_v57 = vpop.xlane.xlu1 %1502 }
 0xdf9   : > { %v1504_v58 = vsub.f32 %v1500_v52, %v1503_v57  ;;  %v2418_v52 = vld [vmem:[%s3034_s12 + $0x28] sm:$0xff]  }
 0xdfb   : > { %v1505_v59 = vmul.f32 1.442695, %v1504_v58 }
 0xdfc   : > { %v1401_v60 = vpop.permute.xlu1 %1400 }
 0xdfd   : > { %2443 = vpow2.f32 %v1505_v59  ;;  %v1406_v61 = vsel %vm816_vm4, %v1401_v60, 0 }
 0xdfe   : > { %2293 = vmatpush3.bf16.msra.mxu1 %v1406_v61 }
 0xdff   : > { %v2442_v62 = vpop.eup %2441  ;;  %2304 = vmatprep.subr.bf16.mxu1 %v2525_v8 }
 0xe00   : > { %v1394_v32 = vsel %vm798_vm3, %v2442_v62, 0.0 }
 0xe01   : > { %1395 = vadd.xlane.f32.xlu0 %v1394_v32 }
 0xe07   : > { %v2444_v63 = vpop.eup %2443 }
 0xe08   : > { %v1507_v0 = vsel %vm798_vm3, %v2444_v63, 0.0 }
 0xe09   : > { %1508 = vadd.xlane.f32.xlu0 %v1507_v0 }
 0xe1f   : > { %1513 = vrot.lane.b32.xlu0 %v1336_v34, %s3075_s29  ;;  %s2165_s29 = sshll.u32 %s2660_s2, 4  ;;  %s2533_s2 = smov [#allocation3]  }
 0xe20   : > { %s2465_s3 = sshll.u32 %s2533_s2, 4  ;;  %s2466_s3 = int_to_ptr.vmem [resolvable:$false] %s2465_s3 }
 0xe21   : > { %s2467_s5 = scalar_lea.vmem %s2466_s3, 32  ;;  %p2468_p0 = scmp.lt.s32.totalorder %s2982_s23, %s2466_s3 }
 0xe22   : > { %p2469_p1 = scmp.lt.s32.totalorder %s2467_s5, %s2461_s0 }
 0xe24   : > { %p2470_p2 = por %p2469_p1, %p2468_p0 }
 0xe26   : > { %p2471_p3 = pnand %p2470_p2, %p2464_p13 }
 0xe8e   : > { %v1396_v1 = vpop.xlane.xlu0 %1395 }
 0xe8f   : > { %2445 = vrcp.f32 %v1396_v1 }
 0xe96   : > { %v1509_v2 = vpop.xlane.xlu0 %1508 }
 0xe97   : > { %2447 = vrcp.f32 %v1509_v2 }
 0xe99   : > { %v2446_v3 = vpop.eup %2445 }
 0xe9a   : > { %v1398_v4 = vmul.f32 %v2446_v3, %v2442_v62  ;;  %v1514_v5 = vpop.permute.xlu0 %1513 }
 0xe9b   : > { %v1519_v7 = vsel %vm816_vm4, %v1514_v5, 0 }
 0xe9c   : > { %v1399_v6 = vpack.c.bf16 %v1398_v4, %v1398_v4 }
 0xe9e   : > { %2295 = vmatmul.mubr.msk.bf16.vlgmr.msra.gmra.mrb[16].mxu1 %vm798_vm3, %v1399_v6  ;;  %v2148_v6 = vld [vmem:[%s3035_s13 + $0x1] ss:$0 sm:$0xff] }
 0xe9f   : > { %2305 = vmatpush3.bf16.msra.mxu1 %v1519_v7  ;;  %2306 = vmatprep.mubr.msk.bf16.mxu1 %vm2526_vm1, %v2525_v8 }
 0xea0   : > { %2318 = vmatprep.subr.bf16.mxu1 %v2525_v8 }
 0xea1   : > { %v2448_v9 = vpop.eup %2447 }
 0xea2   : > { %v1511_v10 = vmul.f32 %v2448_v9, %v2444_v63 }
 0xea4   : > { %v1512_v11 = vpack.c.bf16 %v1511_v10, %v1511_v10 }
 0xea6   : > { %2307 = vmatmul.mubr.msk.bf16.vlgmr.msra.gmra.mrb[20].mxu1 %vm798_vm3, %v1512_v11 }
 0xea7   : > { %2322 = vmatprep.mubr.msk.bf16.mxu1 %vm2526_vm1, %v2525_v8  ;;  %2319 = vmatpush3.bf16.msra.mxu1 %v2415_v40 }
 0xea8   : > { %2320 = vmatprep.subr.bf16.mxu1 %v2525_v8 }
 0xeab   : > { %2321 = vmatpush3.bf16.msra.mxu1 %v2416_v41 }
 0xeac   : > { %2338 = vmatprep.subr.bf16.mxu1 %v2525_v8 }
 0xf71   : > { %v1442_v14 = vpop.f32.mrb[16].mxu1 }
 0xf72   : > { %1448 = vst.msk [vmem:[#allocation2] sm:$0xff] %vm743_vm2, %v1442_v14  ;;  %v2296_v15 = vpop.f32.mrb[17].mxu1 }
 0xf73   : > { %v1445_v16 = vpop.f32.mrb[18].mxu1 }
 0xf74   : > { %v2297_v17 = vpop.f32.mrb[19].mxu1 }
 0xf79   : > { %v1555_v19 = vpop.f32.mrb[20].mxu1 }
 0xf7a   : > { %1562 = vrot.lane.b32.xlu1 %v1555_v19, %s3076_s21  ;;  %v2308_v20 = vpop.f32.mrb[21].mxu1  ;;  %s2980_s21 = scalar_lea.hbm %s3042_s20, %s2165_s29 }
 0xf7b   : > { %v1558_v21 = vpop.f32.mrb[22].mxu1 }
 0xf7c   : > { %v2309_v22 = vpop.f32.mrb[23].mxu1  ;;  %v2421_v21 = vld [vmem:[%s3038_s16] sm:$0xff]  }
 0xf7d   : > { %v2422_v22 = vld [vmem:[%s3038_s16 + $0x8] sm:$0xff]  }
 0xfec   : > { %v1563_v23 = vpop.permute.xlu1 %1562 }
 0xfed   : > { %1565 = vst.msk [vmem:[#allocation2] sm:$0xff] %vm977_vm5, %v1563_v23 }
 0xff4   : > { %v1566_v24 = vld [vmem:[#allocation2] sm:$0xff] }
 0xff5   : > { %v1574_v25 = vpack.c.bf16 %v1566_v24, %v1566_v24 }
 0xff7   : > { %2315 = vmatmul.mubr.msk.bf16.vlgmr.msra.gmra.mrb[28].mxu0 %vm642_vm0, %v1574_v25 }
 0xff8   : > { %2334 = vmatprep.mubr.msk.bf16.mxu0 %vm2526_vm1, %v2525_v8  ;;  %2327 = vmatpush3.bf16.msra.mxu0 %v2417_v51 }
 0xff9   : > { %2328 = vmatprep.subr.bf16.mxu0 %v2525_v8 }
 0xffc   : > { %2329 = vmatpush3.bf16.msra.mxu0 %v2418_v52 }
 0xffd   : > { %2330 = vmatprep.subr.bf16.mxu0 %v2525_v8 }
0x1000   : > { %2331 = vmatpush3.bf16.msra.mxu0 %v2419_v53 }
0x1001   : > { %2332 = vmatprep.subr.bf16.mxu0 %v2525_v8 }
0x1004   : > { %2333 = vmatpush3.bf16.msra.mxu0 %v2420_v54 }
0x10ca   : > { %v1630_v28 = vpop.f32.mrb[28].mxu0 }
0x10cb   : > { %v1631_v29 = vadd.f32 %v2122_v27, %v1630_v28  ;;  %v2316_v30 = vpop.f32.mrb[29].mxu0  ;;  %v2156_v28 = vld [vmem:[%s3036_s14 + $0x1] ss:$0 sm:$0xff] }
0x10cc   : > { %v1633_v31 = vpop.f32.mrb[30].mxu0  ;;  %v2157_v30 = vld [vmem:[%s3037_s15 + $0x1] ss:$0 sm:$0xff] }
0x10cd   : > { %v2317_v33 = vpop.f32.mrb[31].mxu0  ;;  %v1636_v34 = vadd.f32 %v1631_v29, %v2842_v26 }
0x10cf   : > { %v1641_v18 = vsel %vm642_vm0, %v1636_v34, 0.0 }
0x10d0   : > { %1642 = vadd.xlane.f32.xlu1 %v1641_v18  ;;  %v2423_v18 = vld [vmem:[%s3040_s18] sm:$0xff]  }
0x115d   : > { %v1643_v35 = vpop.xlane.xlu1 %1642 }
0x115e   : > { %v1644_v36 = vmul.f32 0.03125, %v1643_v35  ;;  %v2424_v35 = vld [vmem:[%s3040_s18 + $0x8] sm:$0xff]  }
0x1160   : > { %v1645_v37 = vsub.f32 %v1636_v34, %v1644_v36  ;;  %v1867_v36 = vld [vmem:[%s3039_s17] sm:$0x1] }
0x1162   : > { %v1646_v38 = vmul.f32 %v1645_v37, %v1645_v37 }
0x1164   : > { %v1647_v39 = vsel %vm642_vm0, %v1646_v38, 0.0 }
0x1165   : > { %1648 = vadd.xlane.f32.xlu0 %v1647_v39 }
0x11f2   : > { %v1649_v26 = vpop.xlane.xlu0 %1648 }
0x11f3   : > { %v1650_v42 = vmul.f32 0.03125, %v1649_v26 }
0x11f5   : > { %v1651_v43 = vadd.f32 1e-12, %v1650_v42 }
0x11f7   : > { %2449 = vrsqrt.f32 %v1651_v43 }
0x1201   : > { %v2450_v44 = vpop.eup %2449 }
0x1202   : > { %v1653_v46 = vmul.f32 %v2450_v44, %v1645_v37 }
0x1204   : > { %v1660_v48 = vmul.f32 %v2128_v45, %v1653_v46 }
0x1206   : > { %v1667_v49 = vadd.f32 %v2129_v47, %v1660_v48 }
0x1208   : > { %v1675_v50 = vpack.c.bf16 %v1667_v49, %v1667_v49 }
0x120a   : > { %2323 = vmatmul.mubr.msk.bf16.vlgmr.msra.gmra.mrb[24].mxu1 %vm642_vm0, %v1675_v50 }
0x120b   : > { %2342 = vmatprep.mubr.msk.bf16.mxu1 %vm2526_vm1, %v2525_v8  ;;  %2339 = vmatpush3.bf16.msra.mxu1 %v2421_v21 }
0x120c   : > { %2340 = vmatprep.subr.bf16.mxu1 %v2525_v8 }
0x120f   : > { %2341 = vmatpush3.bf16.msra.mxu1 %v2422_v22 }
0x1210   : > { %2346 = vmatprep.subr.bf16.mxu1 %v2525_v8 }
0x12dd   : > { %v1731_v56 = vpop.f32.mrb[24].mxu1 }
0x12de   : > { %v1732_v57 = vadd.f32 %v2135_v55, %v1731_v56  ;;  %v2324_v58 = vpop.f32.mrb[25].mxu1 }
0x12df   : > { %v1734_v59 = vpop.f32.mrb[26].mxu1 }
0x12e0   : > { %v1738_v60 = vmul.f32 0.044715, %v1732_v57  ;;  %v2325_v61 = vpop.f32.mrb[27].mxu1  ;;  %v1737_v2 = vmul.f32 0.5, %v1732_v57 }
0x12e2   : > { %v1739_v62 = vmul.f32 %v1738_v60, %v1732_v57 }
0x12e4   : > { %v1740_v32 = vmul.f32 %v1739_v62, %v1732_v57 }
0x12e6   : > { %v1741_v63 = vadd.f32 %v1740_v32, %v1732_v57 }
0x12e8   : > { %v1742_v0 = vmul.f32 0.7978845, %v1741_v63 }
0x12ea   : > { %2451 = vtanh.f32 %v1742_v0 }
0x12f4   : > { %v2452_v1 = vpop.eup %2451 }
0x12f5   : > { %v1744_v3 = vadd.f32 1.0, %v2452_v1 }
0x12f7   : > { %v1745_v4 = vmul.f32 %v1744_v3, %v1737_v2 }
0x12f9   : > { %v1757_v5 = vpack.c.bf16 %v1745_v4, %v1745_v4 }
0x12fb   : > { %2335 = vmatmul.mubr.msk.bf16.vlgmr.msra.gmra.mrb[32].mxu0 %vm1193_vm6, %v1757_v5 }
0x13ce   : > { %v1825_v7 = vpop.f32.mrb[32].mxu0 }
0x13cf   : > { %v1826_v9 = vadd.f32 %v2148_v6, %v1825_v7  ;;  %v2336_v10 = vpop.f32.mrb[33].mxu0 }
0x13d0   : > { %v1828_v11 = vpop.f32.mrb[34].mxu0 }
0x13d1   : > { %v2337_v12 = vpop.f32.mrb[35].mxu0  ;;  %v1831_v13 = vadd.f32 %v1826_v9, %v1667_v49 }
0x13d3   : > { %v1836_v14 = vsel %vm642_vm0, %v1831_v13, 0.0 }
0x13d4   : > { %1837 = vadd.xlane.f32.xlu0 %v1836_v14 }
0x1461   : > { %v1838_v15 = vpop.xlane.xlu0 %1837 }
0x1462   : > { %v1839_v16 = vmul.f32 0.03125, %v1838_v15 }
0x1464   : > { %v1840_v17 = vsub.f32 %v1831_v13, %v1839_v16 }
0x1466   : > { %v1841_v19 = vmul.f32 %v1840_v17, %v1840_v17 }
0x1468   : > { %v1842_v20 = vsel %vm642_vm0, %v1841_v19, 0.0 }
0x1469   : > { %1843 = vadd.xlane.f32.xlu1 %v1842_v20 }
0x14f6   : > { %v1844_v23 = vpop.xlane.xlu1 %1843 }
0x14f7   : > { %v1845_v24 = vmul.f32 0.03125, %v1844_v23 }
0x14f9   : > { %v1846_v25 = vadd.f32 1e-12, %v1845_v24 }
0x14fb   : > { %2453 = vrsqrt.f32 %v1846_v25 }
0x1505   : > { %v2454_v27 = vpop.eup %2453 }
0x1506   : > { %v1848_v29 = vmul.f32 %v2454_v27, %v1840_v17 }
0x1508   : > { %v1855_v31 = vmul.f32 %v2156_v28, %v1848_v29 }
0x150a   : > { %v1862_v33 = vadd.f32 %v2157_v30, %v1855_v31 }
0x150c   : > { %v1868_v34 = vpack.c.bf16 %v1862_v33, %v1862_v33 }
0x150e   : > { %2343 = vmatmul.mubr.msk.bf16.vlgmr.msra.gmra.mrb[28].mxu1 %vm642_vm0, %v1868_v34 }
0x150f   : > { %2350 = vmatprep.mubr.msk.bf16.mxu1 %vm2526_vm1, %v2525_v8  ;;  %2347 = vmatpush3.bf16.msra.mxu1 %v2423_v18 }
0x1510   : > { %2348 = vmatprep.subr.bf16.mxu1 %v2525_v8  ;;  %v1929_v8 = vld [vmem:[%s3041_s19] sm:$0x1] }
0x1513   : > { %2349 = vmatpush3.bf16.msra.mxu1 %v2424_v35 }
0x15e1   : > { %v1918_v37 = vpop.f32.mrb[28].mxu1 }
0x15e2   : > { %v1919_v38 = vadd.f32 %v1918_v37, %v1867_v36  ;;  %v2344_v39 = vpop.f32.mrb[29].mxu1 }
0x15e3   : > { %v1921_v40 = vpop.f32.mrb[30].mxu1 }
0x15e4   : > { %2455 = vtanh.f32 %v1919_v38  ;;  %v2345_v41 = vpop.f32.mrb[31].mxu1 }
0x15ee   : > { %v2456_v26 = vpop.eup %2455 }
0x15ef   : > { %v1930_v42 = vpack.c.bf16 %v2456_v26, %v2456_v26 }
0x15f1   : > { %2351 = vmatmul.mubr.msk.bf16.vlgmr.msra.gmra.mrb[32].mxu1 %vm642_vm0, %v1930_v42 }
0x16c4   : > { %v1980_v43 = vpop.f32.mrb[32].mxu1 }
0x16c5   : > { %v1981_v44 = vadd.f32 %v1980_v43, %v1929_v8  ;;  %v2352_v45 = vpop.f32.mrb[33].mxu1 }
0x16c6   : > { %v1983_v46 = vpop.f32.mrb[34].mxu1 }
0x16c7   : > { %v2164_v47 = vmul.f32 -1.442695, %v1981_v44  ;;  %v2353_v48 = vpop.f32.mrb[35].mxu1 }
0x16c9   : > { %2457 = vpow2.f32 %v2164_v47 }
0x16d3   : > { %v2458_v49 = vpop.eup %2457 }
0x16d4   : > { %v1989_v50 = vadd.f32 1.0, %v2458_v49 }
0x16d6   : > { %2459 = vrcp.f32 %v1989_v50 }
0x16e0   : > { %v2460_v51 = vpop.eup %2459 }
0x16e1   : > { %1992 = vst [vmem:[%s630_s26] sm:$0x1] %v2460_v51 }
0x16e2   : > { %2474 = shalt.err (!%p2471_p3)
}
0x16e3   : > { %s2475_s25 = scalar_lea.hbm %s2980_s21, 16  ;;  %s2479_s28 = scalar_lea.hbm %s3042_s20, 32 }
0x16e4   : > { %p2476_p4 = scmp.ne.s32.totalorder %s2980_s21, %s2475_s25  ;;  %p2480_p9 = scmp.lt.u32.totalorder %s2980_s21, %s3042_s20 }
0x16e5   : > { %p2481_p10 = scmp.lt.u32.totalorder %s2479_s28, %s2475_s25  ;;  %p2483_p12 = scmp.lt.u32.totalorder %s2475_s25, %s2980_s21 }
0x16e6   : > { %p2477_p7 = pnand %p2476_p4, %p2677_p5 }
0x16e7   : > { %p2482_p11 = por %p2481_p10, %p2480_p9 }
0x16e8   : > { %p2478_p8 = pneg %p2477_p7 }
0x16e9   : > { %p2484_p13 = por %p2483_p12, %p2482_p11 }
0x16eb   : > { %p2485_p0 = pnand %p2484_p13, %p2478_p8 }
0x16ed   : > { %2488 = shalt.err (!%p2485_p0)
}
0x16ee   : > { %2354 = dma.vmem_to_hbm [thread:$0]  (%p2677_p5), %s2982_s23, 16, %s2980_s21, %s1994_s27  }
0x16ef PF: > { %p2360_p1 = scmp.ge.s32.totalorder %s2523_s24, 2  ;;  %s2018_s0 = sand.u32 1, %s2511_s1  }
0x16f0   : > { %s2019_s2 = scalar_lea.sflag [#allocation4], %s2018_s0 }
0x16f1   : > { %p2357_p2 = pnand %p2360_p1, %p2681_p6 }
0x16f3   : > { %2506 = dma.done.wait (!%p2357_p2), %s2019_s2, 16  }
0x16f4   : > { %2508 = vsyncadd (!%p2357_p2), %s2019_s2, 4294967280  ;;  %s3078_s24 = sld [smem:[#allocation7_spill]]  ;;  %s3079_s25 = sld [smem:[#allocation6_spill]] }
0x16f5   : > { %s3080_s23 = sld [smem:[#allocation8_spill]]  ;;  %s3081_s1 = smov %s2515_s22 }
0x16fa   : > { %p30_p3 = scmp.ge.s32.totalorder %s3078_s24, 4   ;;  %s3082_s22 = smov %s3079_s25 }
0x16fc   :  { %32 = sbr.rel (!%p30_p3) target bundleno = 10 (0xa), region = 150 }
0x1703   :  { %2023 = vsyncpa [#allocation4], 1 }
0x1704   :  { %2025 = vsyncpa [#allocation4 + $0x1], 1 }

</bundles_post_ra>
